<compile_context>
chip_gen: v5e
topology: v5e:2x2
jax: 0.10.0
libtpu: 0.0.40
codegen_flags: <defaults>
</compile_context>

<pallas_src>
import math

import jax
import jax.numpy as jnp
from jax.experimental import pallas as pl
from jax.experimental.pallas import tpu as pltpu  # noqa: F401  (kept for extensions)

# ----------------------------- small synthetic config ------------------------
B, S = 2, 8          # batch, sequence length
H = 32               # hidden size (module uses 768; small synthetic stand-in)
NH = 4               # attention heads
DH = H // NH         # head dim
BNH = B * NH
FF = 64              # intermediate (FFN) size
LAYERS = 2           # encoder layers
VOCAB = 50
MAX_POS = 16
NUM_LABELS = 6       # classifier head exists in __init__ but is unused in forward
LN_EPS = 1e-12
DTYPE = jnp.float32  # bf16 weights are the lever for real sizes (v6e/v7x); f32 here


# ----------------------------- fused encoder kernel --------------------------
def _layernorm(x, g, b):
    mu = jnp.mean(x, axis=-1, keepdims=True)
    xc = x - mu
    var = jnp.mean(xc * xc, axis=-1, keepdims=True)
    return xc * jax.lax.rsqrt(var + LN_EPS) * g + b


def _rep_heads(w):
    """[NH, ...] -> [B*NH, ...] by replicating over batch (leading dims only)."""
    return jnp.broadcast_to(w[None], (B,) + w.shape).reshape((BNH,) + w.shape[1:])


def _encoder_kernel(emb_ref, mask_ref, w_attn_ref, b_qkv_ref,
                    wi_ref, bi_ref, wd_ref, vecs_ref, out_ref):
    """Whole Electra encoder.  All weights + activations live in VMEM/vregs."""
    scale = 1.0 / math.sqrt(DH)

    # additive attention bias, replicated per head (hoisted out of the layer loop)
    bias = (1.0 - mask_ref[...]) * -10000.0                            # [B, S]
    bias = jnp.broadcast_to(bias[:, None, None, :],
                            (B, NH, 1, S)).reshape(BNH, 1, S)          # [B*NH, 1, S]

    # Embedding LayerNorm.  Dropout(0.1) == identity in eval.
    hidden = _layernorm(emb_ref[...], vecs_ref[0], vecs_ref[1])        # [B*S, H]

    for l in range(LAYERS):                 # tiny static unroll (see TODO above)
        base = 2 + 6 * l
        bo = vecs_ref[base + 0]
        bd = vecs_ref[base + 1]
        ln1_g, ln1_b = vecs_ref[base + 2], vecs_ref[base + 3]
        ln2_g, ln2_b = vecs_ref[base + 4], vecs_ref[base + 5]

        # ---------- self-attention: one batched matmul per step over B*NH ------
        hidden_rep = jnp.broadcast_to(hidden.reshape(B, S, H)[:, None],
                                      (B, NH, S, H)).reshape(BNH, S, H)
        wq = _rep_heads(w_attn_ref[l, 0])                              # [B*NH, DH, H]
        wk = _rep_heads(w_attn_ref[l, 1])
        wv = _rep_heads(w_attn_ref[l, 2])
        wo = _rep_heads(w_attn_ref[l, 3])                              # [B*NH, DH, H]
        bq = _rep_heads(b_qkv_ref[l, 0])                               # [B*NH, 1, DH]
        bk = _rep_heads(b_qkv_ref[l, 1])
        bv = _rep_heads(b_qkv_ref[l, 2])

        q = jnp.einsum('bsh,bdh->bsd', hidden_rep, wq,
                       preferred_element_type=jnp.float32) + bq        # [B*NH, S, DH]
        k = jnp.einsum('bsh,bdh->bsd', hidden_rep, wk,
                       preferred_element_type=jnp.float32) + bk
        v = jnp.einsum('bsh,bdh->bsd', hidden_rep, wv,
                       preferred_element_type=jnp.float32) + bv

        s = jnp.einsum('bqd,bkd->bqk', q, k,
                       preferred_element_type=jnp.float32) * scale + bias   # [B*NH, S, S]
        s = s - jnp.max(s, axis=-1, keepdims=True)
        p = jnp.exp(s)
        p = p * pl.reciprocal(jnp.sum(p, axis=-1, keepdims=True), approx=True)

        ctx = jnp.einsum('bqk,bkd->bqd', p, v,
                         preferred_element_type=jnp.float32)           # [B*NH, S, DH]
        # per-head output projection + sum over heads (no VMEM scratch, no masked stores)
        attn = jnp.einsum('bsd,bdh->bsh', ctx, wo,
                          preferred_element_type=jnp.float32)          # [B*NH, S, H]
        attn = attn.reshape(B, NH, S, H).sum(axis=1).reshape(B * S, H) + bo
        hidden = _layernorm(attn + hidden, ln1_g, ln1_b)

        # ---------- feed forward ----------
        inter = jnp.dot(hidden, wi_ref[l],
                        preferred_element_type=jnp.float32) + bi_ref[l]
        # TODO(synk): HF Electra uses exact erf gelu; tanh approximation kept
        # for Mosaic-safe lowering (EUP tanh).
        inter = jax.nn.gelu(inter, approximate=True)
        ffn = jnp.dot(inter, wd_ref[l],
                      preferred_element_type=jnp.float32) + bd
        hidden = _layernorm(ffn + hidden, ln2_g, ln2_b)

    # Emit only the CLS rows -> [B, H]: one-hot row selection on the MXU.
    col = jax.lax.broadcasted_iota(jnp.int32, (B, B * S), 1)
    cls_pos = jax.lax.broadcasted_iota(jnp.int32, (B, B * S), 0) * S
    sel = (col == cls_pos).astype(jnp.float32)                         # [B, B*S]
    out_ref[...] = jnp.dot(sel, hidden,
                           preferred_element_type=jnp.float32).astype(out_ref.dtype)


# ----------------------------- parameter init --------------------------------
def init_params(key):
    def w(k, fan_in, fan_out):
        return 0.02 * jax.random.normal(k, (fan_in, fan_out), DTYPE)

    keys = jax.random.split(key, 4 + LAYERS)
    params = {
        "word_emb": 0.02 * jax.random.normal(keys[0], (VOCAB, H), DTYPE),
        "pos_emb": 0.02 * jax.random.normal(keys[1], (MAX_POS, H), DTYPE),
        "type_emb": 0.02 * jax.random.normal(keys[2], (2, H), DTYPE),
        "emb_ln_g": jnp.ones((H,), DTYPE),
        "emb_ln_b": jnp.zeros((H,), DTYPE),
        # classifier head from __init__ (unused in forward, kept for fidelity)
        "cls_w": 0.02 * jax.random.normal(keys[3], (H, NUM_LABELS), DTYPE),
        "cls_b": jnp.zeros((NUM_LABELS,), DTYPE),
    }
    names = ["wq", "wk", "wv", "wo", "wi", "wd"]
    per_layer = {n: [] for n in names}
    for l in range(LAYERS):
        lk = jax.random.split(keys[4 + l], 6)
        per_layer["wq"].append(w(lk[0], H, H))
        per_layer["wk"].append(w(lk[1], H, H))
        per_layer["wv"].append(w(lk[2], H, H))
        per_layer["wo"].append(w(lk[3], H, H))
        per_layer["wi"].append(w(lk[4], H, FF))
        per_layer["wd"].append(w(lk[5], FF, H))
    for n in names:
        params[n] = jnp.stack(per_layer[n])
    params.update({
        "bq": jnp.zeros((LAYERS, H), DTYPE), "bk": jnp.zeros((LAYERS, H), DTYPE),
        "bv": jnp.zeros((LAYERS, H), DTYPE), "bo": jnp.zeros((LAYERS, H), DTYPE),
        "bi": jnp.zeros((LAYERS, FF), DTYPE), "bd": jnp.zeros((LAYERS, H), DTYPE),
        "ln1_g": jnp.ones((LAYERS, H), DTYPE), "ln1_b": jnp.zeros((LAYERS, H), DTYPE),
        "ln2_g": jnp.ones((LAYERS, H), DTYPE), "ln2_b": jnp.zeros((LAYERS, H), DTYPE),
    })
    return params


def pack_params(p):
    """Wrapper-side layout plumbing: build lane-dense, consolidated kernel slabs."""
    # per-head projection weights, stored transposed so the contraction dim (H)
    # stays on the lane axis: w_attn[l, which, n, d, i]
    wq_t = jnp.transpose(p["wq"], (0, 2, 1)).reshape(LAYERS, NH, DH, H)
    wk_t = jnp.transpose(p["wk"], (0, 2, 1)).reshape(LAYERS, NH, DH, H)
    wv_t = jnp.transpose(p["wv"], (0, 2, 1)).reshape(LAYERS, NH, DH, H)
    wo_h = p["wo"].reshape(LAYERS, NH, DH, H)          # rows n*DH:(n+1)*DH of Wo
    w_attn = jnp.stack([wq_t, wk_t, wv_t, wo_h], axis=1)       # [L, 4, NH, DH, H]

    b_qkv = jnp.stack([p["bq"], p["bk"], p["bv"]], axis=1)     # [L, 3, H]
    b_qkv = b_qkv.reshape(LAYERS, 3, NH, 1, DH)

    emb_vecs = jnp.stack([p["emb_ln_g"], p["emb_ln_b"]], axis=0)         # [2, H]
    layer_vecs = jnp.stack([p["bo"], p["bd"], p["ln1_g"], p["ln1_b"],
                            p["ln2_g"], p["ln2_b"]], axis=1)             # [L, 6, H]
    vecs = jnp.concatenate([emb_vecs, layer_vecs.reshape(LAYERS * 6, H)],
                           axis=0).reshape(2 + 6 * LAYERS, 1, H)

    return {
        "word_emb": p["word_emb"], "pos_emb": p["pos_emb"], "type_emb": p["type_emb"],
        "w_attn": w_attn, "b_qkv": b_qkv,
        "wi": p["wi"], "bi": p["bi"].reshape(LAYERS, 1, FF), "wd": p["wd"],
        "vecs": vecs,
    }


# ----------------------------- model forward ---------------------------------
def custom_text_classification_forward(packed, input_ids, attention_mask):
    """Equivalent of ElectraModel(...).last_hidden_state[:, 0, :]."""
    # TODO(synk): at real sequence lengths, fold this gather into the kernel via
    # scalar-prefetched input_ids (pl.Element row gather) to skip an HBM round trip.
    word = jnp.take(packed["word_emb"], input_ids, axis=0)              # [B, S, H]
    pos = packed["pos_emb"][:S][None, :, :]
    typ = packed["type_emb"][0][None, None, :]
    emb = (word + pos + typ).reshape(B * S, H)                          # [B*S, H]
    mask = attention_mask.astype(DTYPE)                                 # [B, S]

    in_arrays = [emb, mask, packed["w_attn"], packed["b_qkv"],
                 packed["wi"], packed["bi"], packed["wd"], packed["vecs"]]

    def full(shape):
        return pl.BlockSpec(shape, lambda: (0,) * len(shape))

    return pl.pallas_call(
        _encoder_kernel,
        out_shape=jax.ShapeDtypeStruct((B, H), DTYPE),                  # CLS rows only
        in_specs=[full(a.shape) for a in in_arrays],
        out_specs=full((B, H)),
    )(*in_arrays)


# ----------------------------- pure-JAX reference -----------------------------
def reference_forward(params, input_ids, attention_mask):
    word = jnp.take(params["word_emb"], input_ids, axis=0)
    pos = params["pos_emb"][:S][None, :, :]
    typ = params["type_emb"][0][None, None, :]
    hidden = (word + pos + typ).reshape(B * S, H)

    def ln(x, g, b):
        mu = jnp.mean(x, -1, keepdims=True)
        var = jnp.mean((x - mu) ** 2, -1, keepdims=True)
        return (x - mu) * jax.lax.rsqrt(var + LN_EPS) * g + b

    hidden = ln(hidden, params["emb_ln_g"], params["emb_ln_b"])
    bias = (1.0 - attention_mask.astype(DTYPE)) * -10000.0              # [B, S]
    for l in range(LAYERS):
        q = hidden @ params["wq"][l] + params["bq"][l]
        k = hidden @ params["wk"][l] + params["bk"][l]
        v = hidden @ params["wv"][l] + params["bv"][l]
        qh = q.reshape(B, S, NH, DH).transpose(0, 2, 1, 3)
        kh = k.reshape(B, S, NH, DH).transpose(0, 2, 1, 3)
        vh = v.reshape(B, S, NH, DH).transpose(0, 2, 1, 3)
        s = jnp.einsum("bhqd,bhkd->bhqk", qh, kh) / math.sqrt(DH)
        s = s + bias[:, None, None, :]
        p = jax.nn.softmax(s, axis=-1)
        ctx = jnp.einsum("bhqk,bhkd->bhqd", p, vh)
        ctx = ctx.transpose(0, 2, 1, 3).reshape(B * S, H)
        attn = ctx @ params["wo"][l] + params["bo"][l]
        hidden = ln(attn + hidden, params["ln1_g"][l], params["ln1_b"][l])
        inter = jax.nn.gelu(hidden @ params["wi"][l] + params["bi"][l],
                            approximate=True)
        ffn = inter @ params["wd"][l] + params["bd"][l]
        hidden = ln(ffn + hidden, params["ln2_g"][l], params["ln2_b"][l])
    return hidden.reshape(B, S, H)[:, 0, :]


# ----------------------------- main -------------------------------------------
if __name__ == "__main__":
    key = jax.random.PRNGKey(0)
    k_params, k_ids = jax.random.split(key)
    params = init_params(k_params)
    packed = pack_params(params)          # one-time wrapper-side layout plumbing

    input_ids = jax.random.randint(k_ids, (B, S), 0, VOCAB, dtype=jnp.int32)
    attention_mask = jnp.ones((B, S), dtype=jnp.int32)
    attention_mask = attention_mask.at[1, S - 2:].set(0)  # pad last 2 tokens of batch 1

    fwd = jax.jit(custom_text_classification_forward)
    out = fwd(packed, input_ids, attention_mask)
    jax.block_until_ready(out)
    assert out.shape == (B, H) and out.dtype == DTYPE

    ref = reference_forward(params, input_ids, attention_mask)
    err = float(jnp.max(jnp.abs(out - ref)))
    assert err < 5e-3, f"max abs error {err}"

    print("KERNEL_OK")
</pallas_src>

<mosaic_0001>
module attributes {stable_mosaic.version = 11 : i64} {
  func.func @_encoder_kernel(%arg0: memref<16x32xf32, #tpu.memory_space<vmem>>, %arg1: memref<2x8xf32, #tpu.memory_space<vmem>>, %arg2: memref<2x4x4x8x32xf32, #tpu.memory_space<vmem>>, %arg3: memref<2x3x4x1x8xf32, #tpu.memory_space<vmem>>, %arg4: memref<2x32x64xf32, #tpu.memory_space<vmem>>, %arg5: memref<2x1x64xf32, #tpu.memory_space<vmem>>, %arg6: memref<2x64x32xf32, #tpu.memory_space<vmem>>, %arg7: memref<14x1x32xf32, #tpu.memory_space<vmem>>, %arg8: memref<2x32xf32, #tpu.memory_space<vmem>>) attributes {dimension_semantics = [], scalar_prefetch = 0 : i64, scratch_operands = 0 : i64, tpu.core_type = #tpu.core_type<tc>} {
    %c0 = arith.constant 0 : index
    %c0_0 = arith.constant 0 : index
    %0 = vector.load %arg1[%c0, %c0_0] : memref<2x8xf32, #tpu.memory_space<vmem>>, vector<2x8xf32>
    %cst = arith.constant 1.000000e+00 : f32
    %1 = vector.broadcast %cst : f32 to vector<2x8xf32>
    %2 = arith.subf %1, %0 : vector<2x8xf32>
    %cst_1 = arith.constant -1.000000e+04 : f32
    %3 = vector.broadcast %cst_1 : f32 to vector<2x8xf32>
    %4 = arith.mulf %2, %3 : vector<2x8xf32>
    %5 = vector.shape_cast %4 : vector<2x8xf32> to vector<2x1x1x8xf32>
    %6 = vector.shape_cast %5 : vector<2x1x1x8xf32> to vector<2x1x1x8xf32>
    %7 = vector.broadcast %6 : vector<2x1x1x8xf32> to vector<2x4x1x8xf32>
    %8 = vector.shape_cast %7 : vector<2x4x1x8xf32> to vector<8x1x8xf32>
    %c0_2 = arith.constant 0 : index
    %c0_3 = arith.constant 0 : index
    %9 = vector.load %arg0[%c0_2, %c0_3] : memref<16x32xf32, #tpu.memory_space<vmem>>, vector<16x32xf32>
    %c0_4 = arith.constant 0 : index
    %c0_5 = arith.constant 0 : index
    %c0_6 = arith.constant 0 : index
    %10 = vector.load %arg7[%c0_4, %c0_5, %c0_6] : memref<14x1x32xf32, #tpu.memory_space<vmem>>, vector<1x1x32xf32>
    %11 = vector.shape_cast %10 : vector<1x1x32xf32> to vector<1x32xf32>
    %c1 = arith.constant 1 : index
    %c0_7 = arith.constant 0 : index
    %c0_8 = arith.constant 0 : index
    %12 = vector.load %arg7[%c1, %c0_7, %c0_8] : memref<14x1x32xf32, #tpu.memory_space<vmem>>, vector<1x1x32xf32>
    %13 = vector.shape_cast %12 : vector<1x1x32xf32> to vector<1x32xf32>
    %cst_9 = arith.constant dense<0.000000e+00> : vector<16xf32>
    %14 = vector.multi_reduction <add>, %9, %cst_9 [1] : vector<16x32xf32> to vector<16xf32>
    %15 = vector.shape_cast %14 : vector<16xf32> to vector<16x1xf32>
    %cst_10 = arith.constant 3.200000e+01 : f32
    %16 = vector.broadcast %cst_10 : f32 to vector<16x1xf32>
    %17 = arith.divf %15, %16 : vector<16x1xf32>
    %18 = vector.broadcast %17 : vector<16x1xf32> to vector<16x32xf32>
    %19 = arith.subf %9, %18 : vector<16x32xf32>
    %20 = arith.mulf %19, %19 : vector<16x32xf32>
    %cst_11 = arith.constant dense<0.000000e+00> : vector<16xf32>
    %21 = vector.multi_reduction <add>, %20, %cst_11 [1] : vector<16x32xf32> to vector<16xf32>
    %22 = vector.shape_cast %21 : vector<16xf32> to vector<16x1xf32>
    %cst_12 = arith.constant 3.200000e+01 : f32
    %23 = vector.broadcast %cst_12 : f32 to vector<16x1xf32>
    %24 = arith.divf %22, %23 : vector<16x1xf32>
    %cst_13 = arith.constant 9.99999996E-13 : f32
    %25 = vector.broadcast %cst_13 : f32 to vector<16x1xf32>
    %26 = arith.addf %24, %25 : vector<16x1xf32>
    %27 = math.rsqrt %26 : vector<16x1xf32>
    %28 = vector.broadcast %27 : vector<16x1xf32> to vector<16x32xf32>
    %29 = arith.mulf %19, %28 : vector<16x32xf32>
    %30 = vector.broadcast %11 : vector<1x32xf32> to vector<16x32xf32>
    %31 = arith.mulf %29, %30 : vector<16x32xf32>
    %32 = vector.broadcast %13 : vector<1x32xf32> to vector<16x32xf32>
    %33 = arith.addf %31, %32 : vector<16x32xf32>
    %c2 = arith.constant 2 : index
    %c0_14 = arith.constant 0 : index
    %c0_15 = arith.constant 0 : index
    %34 = vector.load %arg7[%c2, %c0_14, %c0_15] : memref<14x1x32xf32, #tpu.memory_space<vmem>>, vector<1x1x32xf32>
    %35 = vector.shape_cast %34 : vector<1x1x32xf32> to vector<1x32xf32>
    %c3 = arith.constant 3 : index
    %c0_16 = arith.constant 0 : index
    %c0_17 = arith.constant 0 : index
    %36 = vector.load %arg7[%c3, %c0_16, %c0_17] : memref<14x1x32xf32, #tpu.memory_space<vmem>>, vector<1x1x32xf32>
    %37 = vector.shape_cast %36 : vector<1x1x32xf32> to vector<1x32xf32>
    %c4 = arith.constant 4 : index
    %c0_18 = arith.constant 0 : index
    %c0_19 = arith.constant 0 : index
    %38 = vector.load %arg7[%c4, %c0_18, %c0_19] : memref<14x1x32xf32, #tpu.memory_space<vmem>>, vector<1x1x32xf32>
    %39 = vector.shape_cast %38 : vector<1x1x32xf32> to vector<1x32xf32>
    %c5 = arith.constant 5 : index
    %c0_20 = arith.constant 0 : index
    %c0_21 = arith.constant 0 : index
    %40 = vector.load %arg7[%c5, %c0_20, %c0_21] : memref<14x1x32xf32, #tpu.memory_space<vmem>>, vector<1x1x32xf32>
    %41 = vector.shape_cast %40 : vector<1x1x32xf32> to vector<1x32xf32>
    %c6 = arith.constant 6 : index
    %c0_22 = arith.constant 0 : index
    %c0_23 = arith.constant 0 : index
    %42 = vector.load %arg7[%c6, %c0_22, %c0_23] : memref<14x1x32xf32, #tpu.memory_space<vmem>>, vector<1x1x32xf32>
    %43 = vector.shape_cast %42 : vector<1x1x32xf32> to vector<1x32xf32>
    %c7 = arith.constant 7 : index
    %c0_24 = arith.constant 0 : index
    %c0_25 = arith.constant 0 : index
    %44 = vector.load %arg7[%c7, %c0_24, %c0_25] : memref<14x1x32xf32, #tpu.memory_space<vmem>>, vector<1x1x32xf32>
    %45 = vector.shape_cast %44 : vector<1x1x32xf32> to vector<1x32xf32>
    %46 = vector.shape_cast %33 : vector<16x32xf32> to vector<2x8x32xf32>
    %47 = vector.shape_cast %46 : vector<2x8x32xf32> to vector<2x1x8x32xf32>
    %48 = vector.shape_cast %47 : vector<2x1x8x32xf32> to vector<2x1x8x32xf32>
    %49 = vector.broadcast %48 : vector<2x1x8x32xf32> to vector<2x4x8x32xf32>
    %50 = vector.shape_cast %49 : vector<2x4x8x32xf32> to vector<8x8x32xf32>
    %c0_26 = arith.constant 0 : index
    %c0_27 = arith.constant 0 : index
    %c0_28 = arith.constant 0 : index
    %c0_29 = arith.constant 0 : index
    %c0_30 = arith.constant 0 : index
    %51 = vector.load %arg2[%c0_26, %c0_27, %c0_28, %c0_29, %c0_30] : memref<2x4x4x8x32xf32, #tpu.memory_space<vmem>>, vector<1x1x4x8x32xf32>
    %52 = vector.shape_cast %51 : vector<1x1x4x8x32xf32> to vector<4x8x32xf32>
    %53 = vector.shape_cast %52 : vector<4x8x32xf32> to vector<1x4x8x32xf32>
    %54 = vector.shape_cast %53 : vector<1x4x8x32xf32> to vector<1x4x8x32xf32>
    %55 = vector.broadcast %54 : vector<1x4x8x32xf32> to vector<2x4x8x32xf32>
    %56 = vector.shape_cast %55 : vector<2x4x8x32xf32> to vector<8x8x32xf32>
    %c0_31 = arith.constant 0 : index
    %c1_32 = arith.constant 1 : index
    %c0_33 = arith.constant 0 : index
    %c0_34 = arith.constant 0 : index
    %c0_35 = arith.constant 0 : index
    %57 = vector.load %arg2[%c0_31, %c1_32, %c0_33, %c0_34, %c0_35] : memref<2x4x4x8x32xf32, #tpu.memory_space<vmem>>, vector<1x1x4x8x32xf32>
    %58 = vector.shape_cast %57 : vector<1x1x4x8x32xf32> to vector<4x8x32xf32>
    %59 = vector.shape_cast %58 : vector<4x8x32xf32> to vector<1x4x8x32xf32>
    %60 = vector.shape_cast %59 : vector<1x4x8x32xf32> to vector<1x4x8x32xf32>
    %61 = vector.broadcast %60 : vector<1x4x8x32xf32> to vector<2x4x8x32xf32>
    %62 = vector.shape_cast %61 : vector<2x4x8x32xf32> to vector<8x8x32xf32>
    %c0_36 = arith.constant 0 : index
    %c2_37 = arith.constant 2 : index
    %c0_38 = arith.constant 0 : index
    %c0_39 = arith.constant 0 : index
    %c0_40 = arith.constant 0 : index
    %63 = vector.load %arg2[%c0_36, %c2_37, %c0_38, %c0_39, %c0_40] : memref<2x4x4x8x32xf32, #tpu.memory_space<vmem>>, vector<1x1x4x8x32xf32>
    %64 = vector.shape_cast %63 : vector<1x1x4x8x32xf32> to vector<4x8x32xf32>
    %65 = vector.shape_cast %64 : vector<4x8x32xf32> to vector<1x4x8x32xf32>
    %66 = vector.shape_cast %65 : vector<1x4x8x32xf32> to vector<1x4x8x32xf32>
    %67 = vector.broadcast %66 : vector<1x4x8x32xf32> to vector<2x4x8x32xf32>
    %68 = vector.shape_cast %67 : vector<2x4x8x32xf32> to vector<8x8x32xf32>
    %c0_41 = arith.constant 0 : index
    %c3_42 = arith.constant 3 : index
    %c0_43 = arith.constant 0 : index
    %c0_44 = arith.constant 0 : index
    %c0_45 = arith.constant 0 : index
    %69 = vector.load %arg2[%c0_41, %c3_42, %c0_43, %c0_44, %c0_45] : memref<2x4x4x8x32xf32, #tpu.memory_space<vmem>>, vector<1x1x4x8x32xf32>
    %70 = vector.shape_cast %69 : vector<1x1x4x8x32xf32> to vector<4x8x32xf32>
    %71 = vector.shape_cast %70 : vector<4x8x32xf32> to vector<1x4x8x32xf32>
    %72 = vector.shape_cast %71 : vector<1x4x8x32xf32> to vector<1x4x8x32xf32>
    %73 = vector.broadcast %72 : vector<1x4x8x32xf32> to vector<2x4x8x32xf32>
    %74 = vector.shape_cast %73 : vector<2x4x8x32xf32> to vector<8x8x32xf32>
    %c0_46 = arith.constant 0 : index
    %c0_47 = arith.constant 0 : index
    %c0_48 = arith.constant 0 : index
    %c0_49 = arith.constant 0 : index
    %c0_50 = arith.constant 0 : index
    %75 = vector.load %arg3[%c0_46, %c0_47, %c0_48, %c0_49, %c0_50] : memref<2x3x4x1x8xf32, #tpu.memory_space<vmem>>, vector<1x1x4x1x8xf32>
    %76 = vector.shape_cast %75 : vector<1x1x4x1x8xf32> to vector<4x1x8xf32>
    %77 = vector.shape_cast %76 : vector<4x1x8xf32> to vector<1x4x1x8xf32>
    %78 = vector.shape_cast %77 : vector<1x4x1x8xf32> to vector<1x4x1x8xf32>
    %79 = vector.broadcast %78 : vector<1x4x1x8xf32> to vector<2x4x1x8xf32>
    %80 = vector.shape_cast %79 : vector<2x4x1x8xf32> to vector<8x1x8xf32>
    %c0_51 = arith.constant 0 : index
    %c1_52 = arith.constant 1 : index
    %c0_53 = arith.constant 0 : index
    %c0_54 = arith.constant 0 : index
    %c0_55 = arith.constant 0 : index
    %81 = vector.load %arg3[%c0_51, %c1_52, %c0_53, %c0_54, %c0_55] : memref<2x3x4x1x8xf32, #tpu.memory_space<vmem>>, vector<1x1x4x1x8xf32>
    %82 = vector.shape_cast %81 : vector<1x1x4x1x8xf32> to vector<4x1x8xf32>
    %83 = vector.shape_cast %82 : vector<4x1x8xf32> to vector<1x4x1x8xf32>
    %84 = vector.shape_cast %83 : vector<1x4x1x8xf32> to vector<1x4x1x8xf32>
    %85 = vector.broadcast %84 : vector<1x4x1x8xf32> to vector<2x4x1x8xf32>
    %86 = vector.shape_cast %85 : vector<2x4x1x8xf32> to vector<8x1x8xf32>
    %c0_56 = arith.constant 0 : index
    %c2_57 = arith.constant 2 : index
    %c0_58 = arith.constant 0 : index
    %c0_59 = arith.constant 0 : index
    %c0_60 = arith.constant 0 : index
    %87 = vector.load %arg3[%c0_56, %c2_57, %c0_58, %c0_59, %c0_60] : memref<2x3x4x1x8xf32, #tpu.memory_space<vmem>>, vector<1x1x4x1x8xf32>
    %88 = vector.shape_cast %87 : vector<1x1x4x1x8xf32> to vector<4x1x8xf32>
    %89 = vector.shape_cast %88 : vector<4x1x8xf32> to vector<1x4x1x8xf32>
    %90 = vector.shape_cast %89 : vector<1x4x1x8xf32> to vector<1x4x1x8xf32>
    %91 = vector.broadcast %90 : vector<1x4x1x8xf32> to vector<2x4x1x8xf32>
    %92 = vector.shape_cast %91 : vector<2x4x1x8xf32> to vector<8x1x8xf32>
    "tpu.trace_start"() <{level = 10 : i32, message = "bsh,bdh->bsd"}> : () -> ()
    %cst_61 = arith.constant dense<0.000000e+00> : vector<8x8x8xf32>
    %93 = tpu.matmul %50, %56, %cst_61 {dimension_numbers = #tpu.dot_dimension_numbers<[2], [2], [1], [1], [0, 0, 0, 1, 1, 1], [0], [0]>} : vector<8x8x32xf32>, vector<8x8x32xf32>, vector<8x8x8xf32> -> vector<8x8x8xf32>
    "tpu.trace_stop"() : () -> ()
    %94 = vector.broadcast %80 : vector<8x1x8xf32> to vector<8x8x8xf32>
    %95 = arith.addf %93, %94 : vector<8x8x8xf32>
    "tpu.trace_start"() <{level = 10 : i32, message = "bsh,bdh->bsd"}> : () -> ()
    %cst_62 = arith.constant dense<0.000000e+00> : vector<8x8x8xf32>
    %96 = tpu.matmul %50, %62, %cst_62 {dimension_numbers = #tpu.dot_dimension_numbers<[2], [2], [1], [1], [0, 0, 0, 1, 1, 1], [0], [0]>} : vector<8x8x32xf32>, vector<8x8x32xf32>, vector<8x8x8xf32> -> vector<8x8x8xf32>
    "tpu.trace_stop"() : () -> ()
    %97 = vector.broadcast %86 : vector<8x1x8xf32> to vector<8x8x8xf32>
    %98 = arith.addf %96, %97 : vector<8x8x8xf32>
    "tpu.trace_start"() <{level = 10 : i32, message = "bsh,bdh->bsd"}> : () -> ()
    %cst_63 = arith.constant dense<0.000000e+00> : vector<8x8x8xf32>
    %99 = tpu.matmul %50, %68, %cst_63 {dimension_numbers = #tpu.dot_dimension_numbers<[2], [2], [1], [1], [0, 0, 0, 1, 1, 1], [0], [0]>} : vector<8x8x32xf32>, vector<8x8x32xf32>, vector<8x8x8xf32> -> vector<8x8x8xf32>
    "tpu.trace_stop"() : () -> ()
    %100 = vector.broadcast %92 : vector<8x1x8xf32> to vector<8x8x8xf32>
    %101 = arith.addf %99, %100 : vector<8x8x8xf32>
    "tpu.trace_start"() <{level = 10 : i32, message = "bqd,bkd->bqk"}> : () -> ()
    %cst_64 = arith.constant dense<0.000000e+00> : vector<8x8x8xf32>
    %102 = tpu.matmul %95, %98, %cst_64 {dimension_numbers = #tpu.dot_dimension_numbers<[2], [2], [1], [1], [0, 0, 0, 1, 1, 1], [0], [0]>} : vector<8x8x8xf32>, vector<8x8x8xf32>, vector<8x8x8xf32> -> vector<8x8x8xf32>
    "tpu.trace_stop"() : () -> ()
    %cst_65 = arith.constant 0.353553385 : f32
    %103 = vector.broadcast %cst_65 : f32 to vector<8x8x8xf32>
    %104 = arith.mulf %102, %103 : vector<8x8x8xf32>
    %105 = vector.broadcast %8 : vector<8x1x8xf32> to vector<8x8x8xf32>
    %106 = arith.addf %104, %105 : vector<8x8x8xf32>
    %cst_66 = arith.constant dense<0xFF800000> : vector<8x8xf32>
    %107 = vector.multi_reduction <maximumf>, %106, %cst_66 [2] : vector<8x8x8xf32> to vector<8x8xf32>
    %108 = vector.shape_cast %107 : vector<8x8xf32> to vector<8x8x1xf32>
    %109 = vector.broadcast %108 : vector<8x8x1xf32> to vector<8x8x8xf32>
    %110 = arith.subf %106, %109 : vector<8x8x8xf32>
    %111 = math.exp %110 : vector<8x8x8xf32>
    %cst_67 = arith.constant dense<0.000000e+00> : vector<8x8xf32>
    %112 = vector.multi_reduction <add>, %111, %cst_67 [2] : vector<8x8x8xf32> to vector<8x8xf32>
    %113 = vector.shape_cast %112 : vector<8x8xf32> to vector<8x8x1xf32>
    %114 = tpu.reciprocal %113 {approx = true} : vector<8x8x1xf32> -> vector<8x8x1xf32>
    %115 = vector.broadcast %114 : vector<8x8x1xf32> to vector<8x8x8xf32>
    %116 = arith.mulf %111, %115 : vector<8x8x8xf32>
    "tpu.trace_start"() <{level = 10 : i32, message = "bqk,bkd->bqd"}> : () -> ()
    %cst_68 = arith.constant dense<0.000000e+00> : vector<8x8x8xf32>
    %117 = tpu.matmul %116, %101, %cst_68 {dimension_numbers = #tpu.dot_dimension_numbers<[2], [1], [1], [2], [0, 0, 0, 1, 1, 2], [0], [0]>} : vector<8x8x8xf32>, vector<8x8x8xf32>, vector<8x8x8xf32> -> vector<8x8x8xf32>
    "tpu.trace_stop"() : () -> ()
    "tpu.trace_start"() <{level = 10 : i32, message = "bsd,bdh->bsh"}> : () -> ()
    %cst_69 = arith.constant dense<0.000000e+00> : vector<8x8x32xf32>
    %118 = tpu.matmul %117, %74, %cst_69 {dimension_numbers = #tpu.dot_dimension_numbers<[2], [1], [1], [2], [0, 0, 0, 1, 1, 2], [0], [0]>} : vector<8x8x8xf32>, vector<8x8x32xf32>, vector<8x8x32xf32> -> vector<8x8x32xf32>
    "tpu.trace_stop"() : () -> ()
    %119 = vector.shape_cast %118 : vector<8x8x32xf32> to vector<2x4x8x32xf32>
    %cst_70 = arith.constant dense<0.000000e+00> : vector<2x8x32xf32>
    %120 = vector.multi_reduction <add>, %119, %cst_70 [1] : vector<2x4x8x32xf32> to vector<2x8x32xf32>
    %121 = vector.shape_cast %120 : vector<2x8x32xf32> to vector<16x32xf32>
    %122 = vector.broadcast %35 : vector<1x32xf32> to vector<16x32xf32>
    %123 = arith.addf %121, %122 : vector<16x32xf32>
    %124 = arith.addf %123, %33 : vector<16x32xf32>
    %cst_71 = arith.constant dense<0.000000e+00> : vector<16xf32>
    %125 = vector.multi_reduction <add>, %124, %cst_71 [1] : vector<16x32xf32> to vector<16xf32>
    %126 = vector.shape_cast %125 : vector<16xf32> to vector<16x1xf32>
    %cst_72 = arith.constant 3.200000e+01 : f32
    %127 = vector.broadcast %cst_72 : f32 to vector<16x1xf32>
    %128 = arith.divf %126, %127 : vector<16x1xf32>
    %129 = vector.broadcast %128 : vector<16x1xf32> to vector<16x32xf32>
    %130 = arith.subf %124, %129 : vector<16x32xf32>
    %131 = arith.mulf %130, %130 : vector<16x32xf32>
    %cst_73 = arith.constant dense<0.000000e+00> : vector<16xf32>
    %132 = vector.multi_reduction <add>, %131, %cst_73 [1] : vector<16x32xf32> to vector<16xf32>
    %133 = vector.shape_cast %132 : vector<16xf32> to vector<16x1xf32>
    %cst_74 = arith.constant 3.200000e+01 : f32
    %134 = vector.broadcast %cst_74 : f32 to vector<16x1xf32>
    %135 = arith.divf %133, %134 : vector<16x1xf32>
    %cst_75 = arith.constant 9.99999996E-13 : f32
    %136 = vector.broadcast %cst_75 : f32 to vector<16x1xf32>
    %137 = arith.addf %135, %136 : vector<16x1xf32>
    %138 = math.rsqrt %137 : vector<16x1xf32>
    %139 = vector.broadcast %138 : vector<16x1xf32> to vector<16x32xf32>
    %140 = arith.mulf %130, %139 : vector<16x32xf32>
    %141 = vector.broadcast %39 : vector<1x32xf32> to vector<16x32xf32>
    %142 = arith.mulf %140, %141 : vector<16x32xf32>
    %143 = vector.broadcast %41 : vector<1x32xf32> to vector<16x32xf32>
    %144 = arith.addf %142, %143 : vector<16x32xf32>
    %c0_76 = arith.constant 0 : index
    %c0_77 = arith.constant 0 : index
    %c0_78 = arith.constant 0 : index
    %145 = vector.load %arg4[%c0_76, %c0_77, %c0_78] : memref<2x32x64xf32, #tpu.memory_space<vmem>>, vector<1x32x64xf32>
    %146 = vector.shape_cast %145 : vector<1x32x64xf32> to vector<32x64xf32>
    %cst_79 = arith.constant dense<0.000000e+00> : vector<16x64xf32>
    %147 = tpu.matmul %144, %146, %cst_79 {dimension_numbers = #tpu.dot_dimension_numbers<[1], [0], [0], [1], [0, 0, 1, 1], [], []>} : vector<16x32xf32>, vector<32x64xf32>, vector<16x64xf32> -> vector<16x64xf32>
    %c0_80 = arith.constant 0 : index
    %c0_81 = arith.constant 0 : index
    %c0_82 = arith.constant 0 : index
    %148 = vector.load %arg5[%c0_80, %c0_81, %c0_82] : memref<2x1x64xf32, #tpu.memory_space<vmem>>, vector<1x1x64xf32>
    %149 = vector.shape_cast %148 : vector<1x1x64xf32> to vector<1x64xf32>
    %150 = vector.broadcast %149 : vector<1x64xf32> to vector<16x64xf32>
    %151 = arith.addf %147, %150 : vector<16x64xf32>
    %152 = arith.mulf %151, %151 : vector<16x64xf32>
    %153 = arith.mulf %151, %152 : vector<16x64xf32>
    %cst_83 = arith.constant 4.471500e-02 : f32
    %154 = vector.broadcast %cst_83 : f32 to vector<16x64xf32>
    %155 = arith.mulf %154, %153 : vector<16x64xf32>
    %156 = arith.addf %151, %155 : vector<16x64xf32>
    %cst_84 = arith.constant 0.797884583 : f32
    %157 = vector.broadcast %cst_84 : f32 to vector<16x64xf32>
    %158 = arith.mulf %157, %156 : vector<16x64xf32>
    %159 = math.tanh %158 : vector<16x64xf32>
    %cst_85 = arith.constant 1.000000e+00 : f32
    %160 = vector.broadcast %cst_85 : f32 to vector<16x64xf32>
    %161 = arith.addf %160, %159 : vector<16x64xf32>
    %cst_86 = arith.constant 5.000000e-01 : f32
    %162 = vector.broadcast %cst_86 : f32 to vector<16x64xf32>
    %163 = arith.mulf %162, %161 : vector<16x64xf32>
    %164 = arith.mulf %151, %163 : vector<16x64xf32>
    %c0_87 = arith.constant 0 : index
    %c0_88 = arith.constant 0 : index
    %c0_89 = arith.constant 0 : index
    %165 = vector.load %arg6[%c0_87, %c0_88, %c0_89] : memref<2x64x32xf32, #tpu.memory_space<vmem>>, vector<1x64x32xf32>
    %166 = vector.shape_cast %165 : vector<1x64x32xf32> to vector<64x32xf32>
    %cst_90 = arith.constant dense<0.000000e+00> : vector<16x32xf32>
    %167 = tpu.matmul %164, %166, %cst_90 {dimension_numbers = #tpu.dot_dimension_numbers<[1], [0], [0], [1], [0, 0, 1, 1], [], []>} : vector<16x64xf32>, vector<64x32xf32>, vector<16x32xf32> -> vector<16x32xf32>
    %168 = vector.broadcast %37 : vector<1x32xf32> to vector<16x32xf32>
    %169 = arith.addf %167, %168 : vector<16x32xf32>
    %170 = arith.addf %169, %144 : vector<16x32xf32>
    %cst_91 = arith.constant dense<0.000000e+00> : vector<16xf32>
    %171 = vector.multi_reduction <add>, %170, %cst_91 [1] : vector<16x32xf32> to vector<16xf32>
    %172 = vector.shape_cast %171 : vector<16xf32> to vector<16x1xf32>
    %cst_92 = arith.constant 3.200000e+01 : f32
    %173 = vector.broadcast %cst_92 : f32 to vector<16x1xf32>
    %174 = arith.divf %172, %173 : vector<16x1xf32>
    %175 = vector.broadcast %174 : vector<16x1xf32> to vector<16x32xf32>
    %176 = arith.subf %170, %175 : vector<16x32xf32>
    %177 = arith.mulf %176, %176 : vector<16x32xf32>
    %cst_93 = arith.constant dense<0.000000e+00> : vector<16xf32>
    %178 = vector.multi_reduction <add>, %177, %cst_93 [1] : vector<16x32xf32> to vector<16xf32>
    %179 = vector.shape_cast %178 : vector<16xf32> to vector<16x1xf32>
    %cst_94 = arith.constant 3.200000e+01 : f32
    %180 = vector.broadcast %cst_94 : f32 to vector<16x1xf32>
    %181 = arith.divf %179, %180 : vector<16x1xf32>
    %cst_95 = arith.constant 9.99999996E-13 : f32
    %182 = vector.broadcast %cst_95 : f32 to vector<16x1xf32>
    %183 = arith.addf %181, %182 : vector<16x1xf32>
    %184 = math.rsqrt %183 : vector<16x1xf32>
    %185 = vector.broadcast %184 : vector<16x1xf32> to vector<16x32xf32>
    %186 = arith.mulf %176, %185 : vector<16x32xf32>
    %187 = vector.broadcast %43 : vector<1x32xf32> to vector<16x32xf32>
    %188 = arith.mulf %186, %187 : vector<16x32xf32>
    %189 = vector.broadcast %45 : vector<1x32xf32> to vector<16x32xf32>
    %190 = arith.addf %188, %189 : vector<16x32xf32>
    %c8 = arith.constant 8 : index
    %c0_96 = arith.constant 0 : index
    %c0_97 = arith.constant 0 : index
    %191 = vector.load %arg7[%c8, %c0_96, %c0_97] : memref<14x1x32xf32, #tpu.memory_space<vmem>>, vector<1x1x32xf32>
    %192 = vector.shape_cast %191 : vector<1x1x32xf32> to vector<1x32xf32>
    %c9 = arith.constant 9 : index
    %c0_98 = arith.constant 0 : index
    %c0_99 = arith.constant 0 : index
    %193 = vector.load %arg7[%c9, %c0_98, %c0_99] : memref<14x1x32xf32, #tpu.memory_space<vmem>>, vector<1x1x32xf32>
    %194 = vector.shape_cast %193 : vector<1x1x32xf32> to vector<1x32xf32>
    %c10 = arith.constant 10 : index
    %c0_100 = arith.constant 0 : index
    %c0_101 = arith.constant 0 : index
    %195 = vector.load %arg7[%c10, %c0_100, %c0_101] : memref<14x1x32xf32, #tpu.memory_space<vmem>>, vector<1x1x32xf32>
    %196 = vector.shape_cast %195 : vector<1x1x32xf32> to vector<1x32xf32>
    %c11 = arith.constant 11 : index
    %c0_102 = arith.constant 0 : index
    %c0_103 = arith.constant 0 : index
    %197 = vector.load %arg7[%c11, %c0_102, %c0_103] : memref<14x1x32xf32, #tpu.memory_space<vmem>>, vector<1x1x32xf32>
    %198 = vector.shape_cast %197 : vector<1x1x32xf32> to vector<1x32xf32>
    %c12 = arith.constant 12 : index
    %c0_104 = arith.constant 0 : index
    %c0_105 = arith.constant 0 : index
    %199 = vector.load %arg7[%c12, %c0_104, %c0_105] : memref<14x1x32xf32, #tpu.memory_space<vmem>>, vector<1x1x32xf32>
    %200 = vector.shape_cast %199 : vector<1x1x32xf32> to vector<1x32xf32>
    %c13 = arith.constant 13 : index
    %c0_106 = arith.constant 0 : index
    %c0_107 = arith.constant 0 : index
    %201 = vector.load %arg7[%c13, %c0_106, %c0_107] : memref<14x1x32xf32, #tpu.memory_space<vmem>>, vector<1x1x32xf32>
    %202 = vector.shape_cast %201 : vector<1x1x32xf32> to vector<1x32xf32>
    %203 = vector.shape_cast %190 : vector<16x32xf32> to vector<2x8x32xf32>
    %204 = vector.shape_cast %203 : vector<2x8x32xf32> to vector<2x1x8x32xf32>
    %205 = vector.shape_cast %204 : vector<2x1x8x32xf32> to vector<2x1x8x32xf32>
    %206 = vector.broadcast %205 : vector<2x1x8x32xf32> to vector<2x4x8x32xf32>
    %207 = vector.shape_cast %206 : vector<2x4x8x32xf32> to vector<8x8x32xf32>
    %c1_108 = arith.constant 1 : index
    %c0_109 = arith.constant 0 : index
    %c0_110 = arith.constant 0 : index
    %c0_111 = arith.constant 0 : index
    %c0_112 = arith.constant 0 : index
    %208 = vector.load %arg2[%c1_108, %c0_109, %c0_110, %c0_111, %c0_112] : memref<2x4x4x8x32xf32, #tpu.memory_space<vmem>>, vector<1x1x4x8x32xf32>
    %209 = vector.shape_cast %208 : vector<1x1x4x8x32xf32> to vector<4x8x32xf32>
    %210 = vector.shape_cast %209 : vector<4x8x32xf32> to vector<1x4x8x32xf32>
    %211 = vector.shape_cast %210 : vector<1x4x8x32xf32> to vector<1x4x8x32xf32>
    %212 = vector.broadcast %211 : vector<1x4x8x32xf32> to vector<2x4x8x32xf32>
    %213 = vector.shape_cast %212 : vector<2x4x8x32xf32> to vector<8x8x32xf32>
    %c1_113 = arith.constant 1 : index
    %c1_114 = arith.constant 1 : index
    %c0_115 = arith.constant 0 : index
    %c0_116 = arith.constant 0 : index
    %c0_117 = arith.constant 0 : index
    %214 = vector.load %arg2[%c1_113, %c1_114, %c0_115, %c0_116, %c0_117] : memref<2x4x4x8x32xf32, #tpu.memory_space<vmem>>, vector<1x1x4x8x32xf32>
    %215 = vector.shape_cast %214 : vector<1x1x4x8x32xf32> to vector<4x8x32xf32>
    %216 = vector.shape_cast %215 : vector<4x8x32xf32> to vector<1x4x8x32xf32>
    %217 = vector.shape_cast %216 : vector<1x4x8x32xf32> to vector<1x4x8x32xf32>
    %218 = vector.broadcast %217 : vector<1x4x8x32xf32> to vector<2x4x8x32xf32>
    %219 = vector.shape_cast %218 : vector<2x4x8x32xf32> to vector<8x8x32xf32>
    %c1_118 = arith.constant 1 : index
    %c2_119 = arith.constant 2 : index
    %c0_120 = arith.constant 0 : index
    %c0_121 = arith.constant 0 : index
    %c0_122 = arith.constant 0 : index
    %220 = vector.load %arg2[%c1_118, %c2_119, %c0_120, %c0_121, %c0_122] : memref<2x4x4x8x32xf32, #tpu.memory_space<vmem>>, vector<1x1x4x8x32xf32>
    %221 = vector.shape_cast %220 : vector<1x1x4x8x32xf32> to vector<4x8x32xf32>
    %222 = vector.shape_cast %221 : vector<4x8x32xf32> to vector<1x4x8x32xf32>
    %223 = vector.shape_cast %222 : vector<1x4x8x32xf32> to vector<1x4x8x32xf32>
    %224 = vector.broadcast %223 : vector<1x4x8x32xf32> to vector<2x4x8x32xf32>
    %225 = vector.shape_cast %224 : vector<2x4x8x32xf32> to vector<8x8x32xf32>
    %c1_123 = arith.constant 1 : index
    %c3_124 = arith.constant 3 : index
    %c0_125 = arith.constant 0 : index
    %c0_126 = arith.constant 0 : index
    %c0_127 = arith.constant 0 : index
    %226 = vector.load %arg2[%c1_123, %c3_124, %c0_125, %c0_126, %c0_127] : memref<2x4x4x8x32xf32, #tpu.memory_space<vmem>>, vector<1x1x4x8x32xf32>
    %227 = vector.shape_cast %226 : vector<1x1x4x8x32xf32> to vector<4x8x32xf32>
    %228 = vector.shape_cast %227 : vector<4x8x32xf32> to vector<1x4x8x32xf32>
    %229 = vector.shape_cast %228 : vector<1x4x8x32xf32> to vector<1x4x8x32xf32>
    %230 = vector.broadcast %229 : vector<1x4x8x32xf32> to vector<2x4x8x32xf32>
    %231 = vector.shape_cast %230 : vector<2x4x8x32xf32> to vector<8x8x32xf32>
    %c1_128 = arith.constant 1 : index
    %c0_129 = arith.constant 0 : index
    %c0_130 = arith.constant 0 : index
    %c0_131 = arith.constant 0 : index
    %c0_132 = arith.constant 0 : index
    %232 = vector.load %arg3[%c1_128, %c0_129, %c0_130, %c0_131, %c0_132] : memref<2x3x4x1x8xf32, #tpu.memory_space<vmem>>, vector<1x1x4x1x8xf32>
    %233 = vector.shape_cast %232 : vector<1x1x4x1x8xf32> to vector<4x1x8xf32>
    %234 = vector.shape_cast %233 : vector<4x1x8xf32> to vector<1x4x1x8xf32>
    %235 = vector.shape_cast %234 : vector<1x4x1x8xf32> to vector<1x4x1x8xf32>
    %236 = vector.broadcast %235 : vector<1x4x1x8xf32> to vector<2x4x1x8xf32>
    %237 = vector.shape_cast %236 : vector<2x4x1x8xf32> to vector<8x1x8xf32>
    %c1_133 = arith.constant 1 : index
    %c1_134 = arith.constant 1 : index
    %c0_135 = arith.constant 0 : index
    %c0_136 = arith.constant 0 : index
    %c0_137 = arith.constant 0 : index
    %238 = vector.load %arg3[%c1_133, %c1_134, %c0_135, %c0_136, %c0_137] : memref<2x3x4x1x8xf32, #tpu.memory_space<vmem>>, vector<1x1x4x1x8xf32>
    %239 = vector.shape_cast %238 : vector<1x1x4x1x8xf32> to vector<4x1x8xf32>
    %240 = vector.shape_cast %239 : vector<4x1x8xf32> to vector<1x4x1x8xf32>
    %241 = vector.shape_cast %240 : vector<1x4x1x8xf32> to vector<1x4x1x8xf32>
    %242 = vector.broadcast %241 : vector<1x4x1x8xf32> to vector<2x4x1x8xf32>
    %243 = vector.shape_cast %242 : vector<2x4x1x8xf32> to vector<8x1x8xf32>
    %c1_138 = arith.constant 1 : index
    %c2_139 = arith.constant 2 : index
    %c0_140 = arith.constant 0 : index
    %c0_141 = arith.constant 0 : index
    %c0_142 = arith.constant 0 : index
    %244 = vector.load %arg3[%c1_138, %c2_139, %c0_140, %c0_141, %c0_142] : memref<2x3x4x1x8xf32, #tpu.memory_space<vmem>>, vector<1x1x4x1x8xf32>
    %245 = vector.shape_cast %244 : vector<1x1x4x1x8xf32> to vector<4x1x8xf32>
    %246 = vector.shape_cast %245 : vector<4x1x8xf32> to vector<1x4x1x8xf32>
    %247 = vector.shape_cast %246 : vector<1x4x1x8xf32> to vector<1x4x1x8xf32>
    %248 = vector.broadcast %247 : vector<1x4x1x8xf32> to vector<2x4x1x8xf32>
    %249 = vector.shape_cast %248 : vector<2x4x1x8xf32> to vector<8x1x8xf32>
    "tpu.trace_start"() <{level = 10 : i32, message = "bsh,bdh->bsd"}> : () -> ()
    %cst_143 = arith.constant dense<0.000000e+00> : vector<8x8x8xf32>
    %250 = tpu.matmul %207, %213, %cst_143 {dimension_numbers = #tpu.dot_dimension_numbers<[2], [2], [1], [1], [0, 0, 0, 1, 1, 1], [0], [0]>} : vector<8x8x32xf32>, vector<8x8x32xf32>, vector<8x8x8xf32> -> vector<8x8x8xf32>
    "tpu.trace_stop"() : () -> ()
    %251 = vector.broadcast %237 : vector<8x1x8xf32> to vector<8x8x8xf32>
    %252 = arith.addf %250, %251 : vector<8x8x8xf32>
    "tpu.trace_start"() <{level = 10 : i32, message = "bsh,bdh->bsd"}> : () -> ()
    %cst_144 = arith.constant dense<0.000000e+00> : vector<8x8x8xf32>
    %253 = tpu.matmul %207, %219, %cst_144 {dimension_numbers = #tpu.dot_dimension_numbers<[2], [2], [1], [1], [0, 0, 0, 1, 1, 1], [0], [0]>} : vector<8x8x32xf32>, vector<8x8x32xf32>, vector<8x8x8xf32> -> vector<8x8x8xf32>
    "tpu.trace_stop"() : () -> ()
    %254 = vector.broadcast %243 : vector<8x1x8xf32> to vector<8x8x8xf32>
    %255 = arith.addf %253, %254 : vector<8x8x8xf32>
    "tpu.trace_start"() <{level = 10 : i32, message = "bsh,bdh->bsd"}> : () -> ()
    %cst_145 = arith.constant dense<0.000000e+00> : vector<8x8x8xf32>
    %256 = tpu.matmul %207, %225, %cst_145 {dimension_numbers = #tpu.dot_dimension_numbers<[2], [2], [1], [1], [0, 0, 0, 1, 1, 1], [0], [0]>} : vector<8x8x32xf32>, vector<8x8x32xf32>, vector<8x8x8xf32> -> vector<8x8x8xf32>
    "tpu.trace_stop"() : () -> ()
    %257 = vector.broadcast %249 : vector<8x1x8xf32> to vector<8x8x8xf32>
    %258 = arith.addf %256, %257 : vector<8x8x8xf32>
    "tpu.trace_start"() <{level = 10 : i32, message = "bqd,bkd->bqk"}> : () -> ()
    %cst_146 = arith.constant dense<0.000000e+00> : vector<8x8x8xf32>
    %259 = tpu.matmul %252, %255, %cst_146 {dimension_numbers = #tpu.dot_dimension_numbers<[2], [2], [1], [1], [0, 0, 0, 1, 1, 1], [0], [0]>} : vector<8x8x8xf32>, vector<8x8x8xf32>, vector<8x8x8xf32> -> vector<8x8x8xf32>
    "tpu.trace_stop"() : () -> ()
    %cst_147 = arith.constant 0.353553385 : f32
    %260 = vector.broadcast %cst_147 : f32 to vector<8x8x8xf32>
    %261 = arith.mulf %259, %260 : vector<8x8x8xf32>
    %262 = vector.broadcast %8 : vector<8x1x8xf32> to vector<8x8x8xf32>
    %263 = arith.addf %261, %262 : vector<8x8x8xf32>
    %cst_148 = arith.constant dense<0xFF800000> : vector<8x8xf32>
    %264 = vector.multi_reduction <maximumf>, %263, %cst_148 [2] : vector<8x8x8xf32> to vector<8x8xf32>
    %265 = vector.shape_cast %264 : vector<8x8xf32> to vector<8x8x1xf32>
    %266 = vector.broadcast %265 : vector<8x8x1xf32> to vector<8x8x8xf32>
    %267 = arith.subf %263, %266 : vector<8x8x8xf32>
    %268 = math.exp %267 : vector<8x8x8xf32>
    %cst_149 = arith.constant dense<0.000000e+00> : vector<8x8xf32>
    %269 = vector.multi_reduction <add>, %268, %cst_149 [2] : vector<8x8x8xf32> to vector<8x8xf32>
    %270 = vector.shape_cast %269 : vector<8x8xf32> to vector<8x8x1xf32>
    %271 = tpu.reciprocal %270 {approx = true} : vector<8x8x1xf32> -> vector<8x8x1xf32>
    %272 = vector.broadcast %271 : vector<8x8x1xf32> to vector<8x8x8xf32>
    %273 = arith.mulf %268, %272 : vector<8x8x8xf32>
    "tpu.trace_start"() <{level = 10 : i32, message = "bqk,bkd->bqd"}> : () -> ()
    %cst_150 = arith.constant dense<0.000000e+00> : vector<8x8x8xf32>
    %274 = tpu.matmul %273, %258, %cst_150 {dimension_numbers = #tpu.dot_dimension_numbers<[2], [1], [1], [2], [0, 0, 0, 1, 1, 2], [0], [0]>} : vector<8x8x8xf32>, vector<8x8x8xf32>, vector<8x8x8xf32> -> vector<8x8x8xf32>
    "tpu.trace_stop"() : () -> ()
    "tpu.trace_start"() <{level = 10 : i32, message = "bsd,bdh->bsh"}> : () -> ()
    %cst_151 = arith.constant dense<0.000000e+00> : vector<8x8x32xf32>
    %275 = tpu.matmul %274, %231, %cst_151 {dimension_numbers = #tpu.dot_dimension_numbers<[2], [1], [1], [2], [0, 0, 0, 1, 1, 2], [0], [0]>} : vector<8x8x8xf32>, vector<8x8x32xf32>, vector<8x8x32xf32> -> vector<8x8x32xf32>
    "tpu.trace_stop"() : () -> ()
    %276 = vector.shape_cast %275 : vector<8x8x32xf32> to vector<2x4x8x32xf32>
    %cst_152 = arith.constant dense<0.000000e+00> : vector<2x8x32xf32>
    %277 = vector.multi_reduction <add>, %276, %cst_152 [1] : vector<2x4x8x32xf32> to vector<2x8x32xf32>
    %278 = vector.shape_cast %277 : vector<2x8x32xf32> to vector<16x32xf32>
    %279 = vector.broadcast %192 : vector<1x32xf32> to vector<16x32xf32>
    %280 = arith.addf %278, %279 : vector<16x32xf32>
    %281 = arith.addf %280, %190 : vector<16x32xf32>
    %cst_153 = arith.constant dense<0.000000e+00> : vector<16xf32>
    %282 = vector.multi_reduction <add>, %281, %cst_153 [1] : vector<16x32xf32> to vector<16xf32>
    %283 = vector.shape_cast %282 : vector<16xf32> to vector<16x1xf32>
    %cst_154 = arith.constant 3.200000e+01 : f32
    %284 = vector.broadcast %cst_154 : f32 to vector<16x1xf32>
    %285 = arith.divf %283, %284 : vector<16x1xf32>
    %286 = vector.broadcast %285 : vector<16x1xf32> to vector<16x32xf32>
    %287 = arith.subf %281, %286 : vector<16x32xf32>
    %288 = arith.mulf %287, %287 : vector<16x32xf32>
    %cst_155 = arith.constant dense<0.000000e+00> : vector<16xf32>
    %289 = vector.multi_reduction <add>, %288, %cst_155 [1] : vector<16x32xf32> to vector<16xf32>
    %290 = vector.shape_cast %289 : vector<16xf32> to vector<16x1xf32>
    %cst_156 = arith.constant 3.200000e+01 : f32
    %291 = vector.broadcast %cst_156 : f32 to vector<16x1xf32>
    %292 = arith.divf %290, %291 : vector<16x1xf32>
    %cst_157 = arith.constant 9.99999996E-13 : f32
    %293 = vector.broadcast %cst_157 : f32 to vector<16x1xf32>
    %294 = arith.addf %292, %293 : vector<16x1xf32>
    %295 = math.rsqrt %294 : vector<16x1xf32>
    %296 = vector.broadcast %295 : vector<16x1xf32> to vector<16x32xf32>
    %297 = arith.mulf %287, %296 : vector<16x32xf32>
    %298 = vector.broadcast %196 : vector<1x32xf32> to vector<16x32xf32>
    %299 = arith.mulf %297, %298 : vector<16x32xf32>
    %300 = vector.broadcast %198 : vector<1x32xf32> to vector<16x32xf32>
    %301 = arith.addf %299, %300 : vector<16x32xf32>
    %c1_158 = arith.constant 1 : index
    %c0_159 = arith.constant 0 : index
    %c0_160 = arith.constant 0 : index
    %302 = vector.load %arg4[%c1_158, %c0_159, %c0_160] : memref<2x32x64xf32, #tpu.memory_space<vmem>>, vector<1x32x64xf32>
    %303 = vector.shape_cast %302 : vector<1x32x64xf32> to vector<32x64xf32>
    %cst_161 = arith.constant dense<0.000000e+00> : vector<16x64xf32>
    %304 = tpu.matmul %301, %303, %cst_161 {dimension_numbers = #tpu.dot_dimension_numbers<[1], [0], [0], [1], [0, 0, 1, 1], [], []>} : vector<16x32xf32>, vector<32x64xf32>, vector<16x64xf32> -> vector<16x64xf32>
    %c1_162 = arith.constant 1 : index
    %c0_163 = arith.constant 0 : index
    %c0_164 = arith.constant 0 : index
    %305 = vector.load %arg5[%c1_162, %c0_163, %c0_164] : memref<2x1x64xf32, #tpu.memory_space<vmem>>, vector<1x1x64xf32>
    %306 = vector.shape_cast %305 : vector<1x1x64xf32> to vector<1x64xf32>
    %307 = vector.broadcast %306 : vector<1x64xf32> to vector<16x64xf32>
    %308 = arith.addf %304, %307 : vector<16x64xf32>
    %309 = arith.mulf %308, %308 : vector<16x64xf32>
    %310 = arith.mulf %308, %309 : vector<16x64xf32>
    %cst_165 = arith.constant 4.471500e-02 : f32
    %311 = vector.broadcast %cst_165 : f32 to vector<16x64xf32>
    %312 = arith.mulf %311, %310 : vector<16x64xf32>
    %313 = arith.addf %308, %312 : vector<16x64xf32>
    %cst_166 = arith.constant 0.797884583 : f32
    %314 = vector.broadcast %cst_166 : f32 to vector<16x64xf32>
    %315 = arith.mulf %314, %313 : vector<16x64xf32>
    %316 = math.tanh %315 : vector<16x64xf32>
    %cst_167 = arith.constant 1.000000e+00 : f32
    %317 = vector.broadcast %cst_167 : f32 to vector<16x64xf32>
    %318 = arith.addf %317, %316 : vector<16x64xf32>
    %cst_168 = arith.constant 5.000000e-01 : f32
    %319 = vector.broadcast %cst_168 : f32 to vector<16x64xf32>
    %320 = arith.mulf %319, %318 : vector<16x64xf32>
    %321 = arith.mulf %308, %320 : vector<16x64xf32>
    %c1_169 = arith.constant 1 : index
    %c0_170 = arith.constant 0 : index
    %c0_171 = arith.constant 0 : index
    %322 = vector.load %arg6[%c1_169, %c0_170, %c0_171] : memref<2x64x32xf32, #tpu.memory_space<vmem>>, vector<1x64x32xf32>
    %323 = vector.shape_cast %322 : vector<1x64x32xf32> to vector<64x32xf32>
    %cst_172 = arith.constant dense<0.000000e+00> : vector<16x32xf32>
    %324 = tpu.matmul %321, %323, %cst_172 {dimension_numbers = #tpu.dot_dimension_numbers<[1], [0], [0], [1], [0, 0, 1, 1], [], []>} : vector<16x64xf32>, vector<64x32xf32>, vector<16x32xf32> -> vector<16x32xf32>
    %325 = vector.broadcast %194 : vector<1x32xf32> to vector<16x32xf32>
    %326 = arith.addf %324, %325 : vector<16x32xf32>
    %327 = arith.addf %326, %301 : vector<16x32xf32>
    %cst_173 = arith.constant dense<0.000000e+00> : vector<16xf32>
    %328 = vector.multi_reduction <add>, %327, %cst_173 [1] : vector<16x32xf32> to vector<16xf32>
    %329 = vector.shape_cast %328 : vector<16xf32> to vector<16x1xf32>
    %cst_174 = arith.constant 3.200000e+01 : f32
    %330 = vector.broadcast %cst_174 : f32 to vector<16x1xf32>
    %331 = arith.divf %329, %330 : vector<16x1xf32>
    %332 = vector.broadcast %331 : vector<16x1xf32> to vector<16x32xf32>
    %333 = arith.subf %327, %332 : vector<16x32xf32>
    %334 = arith.mulf %333, %333 : vector<16x32xf32>
    %cst_175 = arith.constant dense<0.000000e+00> : vector<16xf32>
    %335 = vector.multi_reduction <add>, %334, %cst_175 [1] : vector<16x32xf32> to vector<16xf32>
    %336 = vector.shape_cast %335 : vector<16xf32> to vector<16x1xf32>
    %cst_176 = arith.constant 3.200000e+01 : f32
    %337 = vector.broadcast %cst_176 : f32 to vector<16x1xf32>
    %338 = arith.divf %336, %337 : vector<16x1xf32>
    %cst_177 = arith.constant 9.99999996E-13 : f32
    %339 = vector.broadcast %cst_177 : f32 to vector<16x1xf32>
    %340 = arith.addf %338, %339 : vector<16x1xf32>
    %341 = math.rsqrt %340 : vector<16x1xf32>
    %342 = vector.broadcast %341 : vector<16x1xf32> to vector<16x32xf32>
    %343 = arith.mulf %333, %342 : vector<16x32xf32>
    %344 = vector.broadcast %200 : vector<1x32xf32> to vector<16x32xf32>
    %345 = arith.mulf %343, %344 : vector<16x32xf32>
    %346 = vector.broadcast %202 : vector<1x32xf32> to vector<16x32xf32>
    %347 = arith.addf %345, %346 : vector<16x32xf32>
    %348 = tpu.iota {dimensions = array<i32: 1>} : vector<2x16xi32>
    %349 = tpu.iota {dimensions = array<i32: 0>} : vector<2x16xi32>
    %c8_i32 = arith.constant 8 : i32
    %350 = vector.broadcast %c8_i32 : i32 to vector<2x16xi32>
    %351 = arith.muli %349, %350 : vector<2x16xi32>
    %352 = arith.cmpi eq, %348, %351 : vector<2x16xi32>
    %353 = arith.extui %352 : vector<2x16xi1> to vector<2x16xi32>
    %354 = arith.sitofp %353 : vector<2x16xi32> to vector<2x16xf32>
    %cst_178 = arith.constant dense<0.000000e+00> : vector<2x32xf32>
    %355 = tpu.matmul %354, %347, %cst_178 {dimension_numbers = #tpu.dot_dimension_numbers<[1], [0], [0], [1], [0, 0, 1, 1], [], []>} : vector<2x16xf32>, vector<16x32xf32>, vector<2x32xf32> -> vector<2x32xf32>
    %c0_179 = arith.constant 0 : index
    %c0_180 = arith.constant 0 : index
    %356 = vector.load %arg8[%c0_179, %c0_180] : memref<2x32xf32, #tpu.memory_space<vmem>>, vector<2x32xf32>
    tpu.vector_store %arg8[%c0_179, %c0_180], %355 {strides = array<i32>} : memref<2x32xf32, #tpu.memory_space<vmem>>, vector<2x32xf32>,
    return
  }
}

</mosaic_0001>

<bundles_post_ra>
// kernel: custom_text_classification_forward.1
= control target key start
LH: loop header
LB: loop body
LE: loop exit
PB: predicated region body
PF: predicated region fallthrough
CT: control target
= control target key end

     0   :  { %vm40_vm0 = vcmask 261120   ;;  %s4274_s0 = inlined_call_operand.vmem [shape: f32[16,32], index: 0, kind: input, shape index: {}]   ;;  %s4275_s1 = inlined_call_operand.vmem [shape: f32[2,8], index: 1, kind: input, shape index: {}]   ;;  %s4276_s2 = inlined_call_operand.vmem [shape: f32[2,4,4,8,32], index: 2, kind: input, shape index: {}]   ;;  %s4277_s3 = inlined_call_operand.vmem [shape: f32[2,3,4,1,8], index: 3, kind: input, shape index: {}]   ;;  %s4278_s4 = inlined_call_operand.vmem [shape: f32[2,32,64], index: 4, kind: input, shape index: {}]   ;;  %s4279_s5 = inlined_call_operand.vmem [shape: f32[2,1,64], index: 5, kind: input, shape index: {}]   ;;  %s4280_s6 = inlined_call_operand.vmem [shape: f32[2,64,32], index: 6, kind: input, shape index: {}]   ;;  %s4281_s7 = inlined_call_operand.vmem [shape: f32[14,1,32], index: 7, kind: input, shape index: {}]   ;;  %s4282_s8 = inlined_call_operand.hbm [shape: f32[2,32], index: 8, kind: output, shape index: {}]  }
   0x1   :  { %v35_v0 = vld [vmem:[%s4274_s0] sm:$0xff]  ;;  %v36_v1 = vld [vmem:[%s4274_s0 + $0x8] sm:$0xff] }
   0x2   :  { %v41_v2 = vsel %vm40_vm0, %v35_v0, 0.0  ;;  %v44_v3 = vsel %vm40_vm0, %v36_v1, 0.0 }
   0x3   :  { %42 = vadd.xlane.f32.xlu0 %v41_v2 }
   0xb   :  { %45 = vadd.xlane.f32.xlu0 %v44_v3 }
   0xc   :  { %13 = vsyncpa [#allocation3], 0  ;;  %v3588_v4 = vmov 32.0   ;;  %v114_v21 = vld [vmem:[%s4276_s2] sm:$0xff]  ;;  %v115_v22 = vld [vmem:[%s4276_s2 + $0x8] sm:$0xff]  ;;  %vm705_vm8 = vcmask 64512  }
   0xd   :  { %3468 = vrcp.f32 %v3588_v4  ;;  %v117_v23 = vld [vmem:[%s4276_s2 + $0x18] sm:$0xff]  ;;  %3208 = vmatpush.xpose.msk.msra.mxu0 %vm40_vm0, %v114_v21  ;;  %3210 = vmatpush.xpose.msk.msra.mxu1 %vm40_vm0, %v115_v22  ;;  %v116_v26 = vld [vmem:[%s4276_s2 + $0x10] sm:$0xff]  ;;  %v3428_v40 = vld [vmem:[%s4281_s7] ss:$0 sm:$0xff]  ;;  %vm1531_vm15 = vcmask 523264   ;;  %s3590_s28 = smov [#allocation2]  }
   0xe   :  { %3214 = vmatpush.xpose.msk.msra.mxu3 %vm40_vm0, %v117_v23  ;;  %3220 = vmatpush.xpose.msk.msra.mxu2 %vm40_vm0, %v116_v26  ;;  %v3190_v28 = vld [vmem:[%s4276_s2 + $0x30] sm:$0xff]  ;;  %v3429_v43 = vld [vmem:[%s4281_s7 + $0x1] ss:$0 sm:$0xff]  ;;  %v3189_v50 = vld [vmem:[%s4276_s2 + $0x28] sm:$0xff]  ;;  %s3172_s0 = sshll.u32 %s4282_s8, 4  ;;  %s3173_s0 = int_to_ptr.hbm [resolvable:$true] %s3172_s0 }
   0xf   :  { %v3191_v51 = vld [vmem:[%s4276_s2 + $0x38] sm:$0xff]  ;;  %v3188_v56 = vld [vmem:[%s4276_s2 + $0x20] sm:$0xff]  ;;  %v3193_v57 = vld [vmem:[%s4276_s2 + $0x48] sm:$0xff] }
  0x10   :  { %v3194_v58 = vld [vmem:[%s4276_s2 + $0x50] sm:$0xff]  ;;  %v3195_v59 = vld [vmem:[%s4276_s2 + $0x58] sm:$0xff]  ;;  %v3192_v60 = vld [vmem:[%s4276_s2 + $0x40] sm:$0xff] }
  0x11   :  { %3218 = vmatpush.xpose.msk.msrb.mxu1 %vm40_vm0, %v115_v22  ;;  %3212 = vmatpush.xpose.msk.msrb.mxu0 %vm40_vm0, %v116_v26  ;;  %v3434_v2 = vld [vmem:[%s4277_s3 + $0x5] ss:$0 sm:$0xff] }
  0x12   :  { %3222 = vmatpush.xpose.msk.msrb.mxu3 %vm40_vm0, %v117_v23  ;;  %3228 = vmatpush.xpose.msk.msrb.mxu2 %vm40_vm0, %v3190_v28 }
  0x13   :  { %v3469_v5 = vpop.eup %3468 }
  0x14   :  { %v48_v6 = vmul.f32 32.0, %v3469_v5  ;;  %vm52_vm1 = vweird.f32 %v3469_v5 }
  0x16   :  { %v49_v7 = vsub.f32 1.0, %v48_v6 }
  0x18   :  { %v50_v8 = vmul.f32 %v3469_v5, %v49_v7 }
  0x1a   :  { %v51_v9 = vadd.f32 %v3469_v5, %v50_v8 }
  0x1c   :  { %v3644_v10 = vsel %vm52_vm1, %v3469_v5, %v51_v9  ;;  %v3431_v5 = vld [vmem:[%s4277_s3 + $0x1] ss:$0 sm:$0xff] }
  0x76   :  { %v43_v11 = vpop.xlane.xlu0 %42 }
  0x77   :  { %v54_v12 = vmul.f32 %v3644_v10, %v43_v11  ;;  %v3435_v11 = vld [vmem:[%s4277_s3 + $0x6] ss:$0 sm:$0xff] }
  0x79   :  { %v56_v13 = vsub.f32 %v35_v0, %v54_v12  ;;  %v3436_v12 = vld [vmem:[%s4277_s3 + $0x7] ss:$0 sm:$0xff] }
  0x7b   :  { %v58_v14 = vmul.f32 %v56_v13, %v56_v13 }
  0x7d   :  { %v60_v15 = vsel %vm40_vm0, %v58_v14, 0.0  ;;  %v3432_v14 = vld [vmem:[%s4277_s3 + $0x3] ss:$0 sm:$0xff] }
  0x7e   :  { %61 = vadd.xlane.f32.xlu1 %v60_v15  ;;  %v46_v16 = vpop.xlane.xlu0 %45  ;;  %v3433_v15 = vld [vmem:[%s4277_s3 + $0x2] ss:$0 sm:$0xff] }
  0x7f   :  { %v55_v17 = vmul.f32 %v3644_v10, %v46_v16 }
  0x81   :  { %v57_v18 = vsub.f32 %v36_v1, %v55_v17 }
  0x83   :  { %v59_v19 = vmul.f32 %v57_v18, %v57_v18 }
  0x85   :  { %v63_v20 = vsel %vm40_vm0, %v59_v19, 0.0 }
  0x86   :  { %64 = vadd.xlane.f32.xlu1 %v63_v20 }
  0xf1   :  { %v62_v24 = vpop.xlane.xlu1 %61 }
  0xf2   :  { %v66_v25 = vmul.f32 %v62_v24, %v3644_v10 }
  0xf4   :  { %v68_v27 = vadd.f32 1e-12, %v66_v25 }
  0xf6   :  { %3470 = vrsqrt.f32 %v68_v27  ;;  %vm76_vm3 = vweird.f32 %v68_v27 }
  0xf9   :  { %v65_v29 = vpop.xlane.xlu1 %64 }
  0xfa   :  { %v67_v30 = vmul.f32 %v65_v29, %v3644_v10  ;;  %v3438_v29 = vld [vmem:[%s4277_s3 + $0x9] ss:$0 sm:$0xff] }
  0xfc   :  { %v3471_v31 = vpop.eup %3470  ;;  %v69_v32 = vadd.f32 1e-12, %v67_v30 }
  0xfd   :  { %v71_v33 = vmul.f32 %v3471_v31, %v68_v27  ;;  %vm77_vm2 = vweird.f32 %v3471_v31 }
  0xfe   :  { %3472 = vrsqrt.f32 %v69_v32  ;;  %vm78_vm4 = vmor %vm76_vm3, %vm77_vm2  ;;  %vm86_vm6 = vweird.f32 %v69_v32 }
  0xff   :  { %v72_v34 = vmul.f32 %v3471_v31, %v71_v33 }
 0x101   :  { %v73_v35 = vmul.f32 0.5, %v72_v34 }
 0x103   :  { %v74_v36 = vsub.f32 1.5, %v73_v35 }
 0x104   :  { %v3473_v37 = vpop.eup %3472 }
 0x105   :  { %v75_v38 = vmul.f32 %v3471_v31, %v74_v36  ;;  %v81_v39 = vmul.f32 %v3473_v37, %v69_v32  ;;  %vm87_vm5 = vweird.f32 %v3473_v37 }
 0x106   :  { %vm88_vm7 = vmor %vm86_vm6, %vm87_vm5 }
 0x107   :  { %v79_v41 = vsel %vm78_vm4, %v3471_v31, %v75_v38  ;;  %v82_v42 = vmul.f32 %v3473_v37, %v81_v39 }
 0x108   :  { %v90_v44 = vmul.f32 %v79_v41, %v56_v13  ;;  %v3437_v13 = vld [vmem:[%s4277_s3 + $0x4] ss:$0 sm:$0xff]  ;;  %v3439_v41 = vld [vmem:[%s4277_s3 + $0xa] ss:$0 sm:$0xff] }
 0x109   :  { %v83_v45 = vmul.f32 0.5, %v82_v42  ;;  %v3440_v42 = vld [vmem:[%s4277_s3 + $0xb] ss:$0 sm:$0xff] }
 0x10a   :  { %v95_v46 = vmul.f32 %v3428_v40, %v90_v44 }
 0x10b   :  { %v84_v47 = vsub.f32 1.5, %v83_v45 }
 0x10c   :  { %v3681_v48 = vadd.f32 %v3429_v43, %v95_v46 }
 0x10d   :  { %v85_v49 = vmul.f32 %v3473_v37, %v84_v47 }
 0x10e   :  { %3209 = vmatmul.msk.f32.vlgmr.msra.gmra.mxu0 %vm40_vm0, %v3681_v48  ;;  %3211 = vmatmul.msk.f32.vlgmr.msra.gmra.mxu1 %vm40_vm0, %v3681_v48 }
 0x10f   :  { %v89_v52 = vsel %vm88_vm7, %v3473_v37, %v85_v49  ;;  %3215 = vmatmul.msk.f32.vlgmr.msra.gmra.mxu3 %vm40_vm0, %v3681_v48  ;;  %3216 = vmatpush.xpose.msk.msra.mxu0 %vm40_vm0, %v114_v21 }
 0x110   :  { %v91_v53 = vmul.f32 %v89_v52, %v57_v18  ;;  %3226 = vmatpush.xpose.msk.msra.mxu1 %vm40_vm0, %v3189_v50  ;;  %3230 = vmatpush.xpose.msk.msra.mxu3 %vm40_vm0, %v3191_v51  ;;  %v3430_v18 = vld [vmem:[%s4277_s3] ss:$0 sm:$0xff] }
 0x112   :  { %v96_v54 = vmul.f32 %v3428_v40, %v91_v53 }
 0x114   :  { %v3698_v55 = vadd.f32 %v3429_v43, %v96_v54  ;;  %v3441_v43 = vld [vmem:[%s4277_s3 + $0x8] ss:$0 sm:$0xff] }
 0x116   :  { %3213 = vmatmul.msk.f32.vlgmr.msrb.gmra.mxu0 %vm40_vm0, %v3681_v48  ;;  %3219 = vmatmul.msk.f32.vlgmr.msrb.gmra.mxu1 %vm40_vm0, %v3698_v55 }
 0x117   :  { %3221 = vmatmul.msk.f32.vlgmr.msra.gmra.mxu2 %vm40_vm0, %v3698_v55  ;;  %3223 = vmatmul.msk.f32.vlgmr.msrb.gmra.mxu3 %vm40_vm0, %v3698_v55 }
 0x118   :  { %3224 = vmatpush.xpose.msk.msrb.mxu0 %vm40_vm0, %v3188_v56  ;;  %3234 = vmatpush.xpose.msk.msrb.mxu1 %vm40_vm0, %v3189_v50 }
 0x119   :  { %3236 = vmatpush.xpose.msk.msra.mxu2 %vm40_vm0, %v3190_v28  ;;  %3238 = vmatpush.xpose.msk.msrb.mxu3 %vm40_vm0, %v3191_v51 }
 0x11e   :  { %3217 = vmatmul.msk.f32.vlgmr.msra.gmra.mxu0 %vm40_vm0, %v3698_v55  ;;  %3227 = vmatmul.msk.f32.vlgmr.msra.gmra.mxu1 %vm40_vm0, %v3681_v48 }
 0x11f   :  { %3229 = vmatmul.msk.f32.vlgmr.msrb.gmra.mxu2 %vm40_vm0, %v3681_v48  ;;  %3231 = vmatmul.msk.f32.vlgmr.msra.gmra.mxu3 %vm40_vm0, %v3681_v48 }
 0x120   :  { %3232 = vmatpush.xpose.msk.msra.mxu0 %vm40_vm0, %v3188_v56  ;;  %3242 = vmatpush.xpose.msk.msra.mxu1 %vm40_vm0, %v3193_v57 }
 0x121   :  { %3244 = vmatpush.xpose.msk.msrb.mxu2 %vm40_vm0, %v3194_v58  ;;  %3246 = vmatpush.xpose.msk.msra.mxu3 %vm40_vm0, %v3195_v59 }
 0x126   :  { %3225 = vmatmul.msk.f32.vlgmr.msrb.gmra.mxu0 %vm40_vm0, %v3681_v48  ;;  %3235 = vmatmul.msk.f32.vlgmr.msrb.gmra.mxu1 %vm40_vm0, %v3698_v55 }
 0x127   :  { %3237 = vmatmul.msk.f32.vlgmr.msra.gmra.mxu2 %vm40_vm0, %v3698_v55  ;;  %3239 = vmatmul.msk.f32.vlgmr.msrb.gmra.mxu3 %vm40_vm0, %v3698_v55 }
 0x128   :  { %3240 = vmatpush.xpose.msk.msrb.mxu0 %vm40_vm0, %v3192_v60  ;;  %3250 = vmatpush.xpose.msk.msrb.mxu1 %vm40_vm0, %v3193_v57 }
 0x129   :  { %3252 = vmatpush.xpose.msk.msra.mxu2 %vm40_vm0, %v3194_v58  ;;  %3254 = vmatpush.xpose.msk.msrb.mxu3 %vm40_vm0, %v3195_v59 }
 0x12e   :  { %3233 = vmatmul.msk.f32.vlgmr.msra.gmra.mxu0 %vm40_vm0, %v3698_v55  ;;  %3243 = vmatmul.msk.f32.vlgmr.msra.gmra.mxu1 %vm40_vm0, %v3681_v48 }
 0x12f   :  { %3245 = vmatmul.msk.f32.vlgmr.msrb.gmra.mxu2 %vm40_vm0, %v3681_v48  ;;  %3247 = vmatmul.msk.f32.vlgmr.msra.gmra.mxu3 %vm40_vm0, %v3681_v48 }
 0x130   :  { %3248 = vmatpush.xpose.msk.msra.mxu0 %vm40_vm0, %v3192_v60  ;;  %v30_v60 = vld [vmem:[%s4275_s1] sm:$0x3] }
 0x136   :  { %3241 = vmatmul.msk.f32.vlgmr.msrb.gmra.mxu0 %vm40_vm0, %v3681_v48  ;;  %3251 = vmatmul.msk.f32.vlgmr.msrb.gmra.mxu1 %vm40_vm0, %v3698_v55 }
 0x137   :  { %3253 = vmatmul.msk.f32.vlgmr.msra.gmra.mxu2 %vm40_vm0, %v3698_v55  ;;  %3255 = vmatmul.msk.f32.vlgmr.msrb.gmra.mxu3 %vm40_vm0, %v3698_v55 }
 0x13e   :  { %3249 = vmatmul.msk.f32.vlgmr.msra.gmra.mxu0 %vm40_vm0, %v3698_v55 }
 0x18b   :  { %v182_v61 = vpop.f32.mrf.mxu0  ;;  %v205_v62 = vpop.f32.mrf.mxu1 }
 0x18c   :  { %v206_v9 = vadd.f32 %v3431_v5, %v205_v62  ;;  %v183_v27 = vadd.f32 %v3430_v18, %v182_v61  ;;  %v31_v61 = vsub.f32 1.0, %v30_v60 }
 0x18e   :  { %v32_v62 = vmul.f32 -10000.0, %v31_v61 }
 0x192   :  { %v251_v63 = vpop.f32.mrf.mxu3 }
 0x193   :  { %v228_v0 = vpop.f32.mrf.mxu0  ;;  %v294_v1 = vpop.f32.mrf.mxu1  ;;  %v252_v25 = vadd.f32 %v3432_v14, %v251_v63  ;;  %v3825_v63 = vperm.slane %v32_v62, 0 }
 0x194   :  { %v229_v26 = vadd.f32 %v3433_v15, %v228_v0  ;;  %v295_v28 = vadd.f32 %v3431_v5, %v294_v1 }
 0x19a   :  { %v314_v3 = vpop.f32.mrf.mxu2  ;;  %v334_v4 = vpop.f32.mrf.mxu3 }
 0x19b   :  { %v274_v6 = vpop.f32.mrf.mxu0  ;;  %v392_v7 = vpop.f32.mrf.mxu1  ;;  %v315_v38 = vadd.f32 %v3433_v15, %v314_v3  ;;  %v335_v39 = vadd.f32 %v3432_v14, %v334_v4 }
 0x19c   :  { %v393_v8 = vadd.f32 %v3434_v2, %v392_v7  ;;  %v275_v40 = vadd.f32 %v3430_v18, %v274_v6 }
 0x19e   :  { %3258 = vmatpush.xpose.msk.msra.mxu1 %vm705_vm8, %v393_v8 }
 0x1a1   :  { %3259 = vmatmul.msk.f32.vlgmr.msra.gmra.mxu1 %vm705_vm8, %v206_v9 }
 0x1a2   :  { %v415_v16 = vpop.f32.mrf.mxu2  ;;  %v438_v17 = vpop.f32.mrf.mxu3 }
 0x1a3   :  { %v416_v19 = vadd.f32 %v3435_v11, %v415_v16  ;;  %v439_v20 = vadd.f32 %v3436_v12, %v438_v17  ;;  %v369_v21 = vpop.f32.mrf.mxu0  ;;  %v478_v22 = vpop.f32.mrf.mxu1 }
 0x1a4   :  { %v370_v23 = vadd.f32 %v3437_v13, %v369_v21  ;;  %v479_v24 = vadd.f32 %v3434_v2, %v478_v22 }
 0x1a5   :  { %3260 = vmatpush.xpose.msk.msrb.mxu2 %vm705_vm8, %v416_v19  ;;  %3262 = vmatpush.xpose.msk.msra.mxu3 %vm705_vm8, %v439_v20 }
 0x1a6   :  { %3256 = vmatpush.xpose.msk.msrb.mxu0 %vm705_vm8, %v370_v23  ;;  %3266 = vmatpush.xpose.msk.msrb.mxu1 %vm705_vm8, %v479_v24 }
 0x1a8   :  { %3261 = vmatmul.msk.f32.vlgmr.msrb.gmra.mxu2 %vm705_vm8, %v229_v26  ;;  %3263 = vmatmul.msk.f32.vlgmr.msra.gmra.mxu3 %vm705_vm8, %v252_v25 }
 0x1a9   :  { %3257 = vmatmul.msk.f32.vlgmr.msrb.gmra.mxu0 %vm705_vm8, %v183_v27  ;;  %3267 = vmatmul.msk.f32.vlgmr.msrb.gmra.mxu1 %vm705_vm8, %v295_v28 }
 0x1aa   :  { %v498_v30 = vpop.f32.mrf.mxu2  ;;  %v518_v31 = vpop.f32.mrf.mxu3 }
 0x1ab   :  { %v499_v32 = vadd.f32 %v3435_v11, %v498_v30  ;;  %v519_v33 = vadd.f32 %v3436_v12, %v518_v31  ;;  %v458_v34 = vpop.f32.mrf.mxu0  ;;  %v576_v35 = vpop.f32.mrf.mxu1  ;;  %v34_v11 = vrot.slane %v32_v62, 1 }
 0x1ac   :  { %v459_v36 = vadd.f32 %v3437_v13, %v458_v34  ;;  %v577_v37 = vadd.f32 %v3438_v29, %v576_v35 }
 0x1ad   :  { %3268 = vmatpush.xpose.msk.msra.mxu2 %vm705_vm8, %v499_v32  ;;  %3270 = vmatpush.xpose.msk.msrb.mxu3 %vm705_vm8, %v519_v33  ;;  %v3832_v16 = vperm.slane %v34_v11, 0 }
 0x1ae   :  { %3264 = vmatpush.xpose.msk.msra.mxu0 %vm705_vm8, %v459_v36  ;;  %1063 = vmatpush.msra.mxu1 %v577_v37 }
 0x1b0   :  { %3269 = vmatmul.msk.f32.vlgmr.msra.gmra.mxu2 %vm705_vm8, %v315_v38  ;;  %3271 = vmatmul.msk.f32.vlgmr.msrb.gmra.mxu3 %vm705_vm8, %v335_v39 }
 0x1b1   :  { %3265 = vmatmul.msk.f32.vlgmr.msra.gmra.mxu0 %vm705_vm8, %v275_v40 }
 0x1b2   :  { %v599_v44 = vpop.f32.mrf.mxu2  ;;  %v622_v45 = vpop.f32.mrf.mxu3 }
 0x1b3   :  { %v600_v46 = vadd.f32 %v3439_v41, %v599_v44  ;;  %v623_v47 = vadd.f32 %v3440_v42, %v622_v45  ;;  %v553_v49 = vpop.f32.mrf.mxu0  ;;  %v662_v50 = vpop.f32.mrf.mxu1 }
 0x1b4   :  { %v554_v51 = vadd.f32 %v3441_v43, %v553_v49  ;;  %v663_v52 = vadd.f32 %v3438_v29, %v662_v50 }
 0x1b5   :  { %1086 = vmatpush.msrb.mxu2 %v600_v46  ;;  %1109 = vmatpush.msra.mxu3 %v623_v47 }
 0x1b6   :  { %1040 = vmatpush.msrb.mxu0 %v554_v51  ;;  %1155 = vmatpush.msrb.mxu1 %v663_v52 }
 0x1ba   :  { %v682_v53 = vpop.f32.mrf.mxu2  ;;  %v702_v54 = vpop.f32.mrf.mxu3 }
 0x1bb   :  { %v683_v56 = vadd.f32 %v3439_v41, %v682_v53  ;;  %v703_v57 = vadd.f32 %v3440_v42, %v702_v54  ;;  %v642_v58 = vpop.f32.mrf.mxu0 }
 0x1bc   :  { %v643_v59 = vadd.f32 %v3441_v43, %v642_v58 }
 0x1bd   :  { %1178 = vmatpush.msra.mxu2 %v683_v56  ;;  %1201 = vmatpush.msrb.mxu3 %v703_v57 }
 0x1be   :  { %1132 = vmatpush.msra.mxu0 %v643_v59 }
 0x21e   :  { %v755_v0 = vpop.f32.mrf.mxu1 }
 0x21f   :  { %v915_v1 = vmul.f32 0.35355338, %v755_v0 }
 0x221   :  { %v927_v2 = vadd.f32 %v3825_v63, %v915_v1 }
 0x223   :  { %v937_v3 = vsel %vm705_vm8, %v927_v2, -inf }
 0x224   :  { %938 = vmax.xlane.f32.xlu1 %v937_v3 }
 0x226   :  { %v729_v4 = vpop.f32.mrf.mxu0  ;;  %v859_v30 = vpop.f32.mrf.mxu1 }
 0x227   :  { %v914_v5 = vmul.f32 0.35355338, %v729_v4  ;;  %v919_v31 = vmul.f32 0.35355338, %v859_v30 }
 0x229   :  { %v926_v6 = vadd.f32 %v3825_v63, %v914_v5  ;;  %v931_v33 = vadd.f32 %v3832_v16, %v919_v31 }
 0x22b   :  { %v781_v7 = vpop.f32.mrf.mxu2  ;;  %v807_v8 = vpop.f32.mrf.mxu3  ;;  %v934_v9 = vsel %vm705_vm8, %v926_v6, -inf  ;;  %v949_v34 = vsel %vm705_vm8, %v931_v33, -inf }
 0x22c   :  { %v916_v12 = vmul.f32 0.35355338, %v781_v7  ;;  %935 = vmax.xlane.f32.xlu0 %v934_v9  ;;  %v917_v17 = vmul.f32 0.35355338, %v807_v8 }
 0x22e   :  { %v833_v13 = vpop.f32.mrf.mxu0  ;;  %v928_v14 = vadd.f32 %v3825_v63, %v916_v12  ;;  %v929_v23 = vadd.f32 %v3825_v63, %v917_v17 }
 0x22f   :  { %v918_v15 = vmul.f32 0.35355338, %v833_v13 }
 0x230   :  { %v940_v18 = vsel %vm705_vm8, %v928_v14, -inf  ;;  %v943_v27 = vsel %vm705_vm8, %v929_v23, -inf }
 0x231   :  { %941 = vmax.xlane.f32.xlu2 %v940_v18  ;;  %v930_v19 = vadd.f32 %v3832_v16, %v918_v15 }
 0x233   :  { %v911_v20 = vpop.f32.mrf.mxu3  ;;  %v946_v21 = vsel %vm705_vm8, %v930_v19, -inf  ;;  %v885_v24 = vpop.f32.mrf.mxu2 }
 0x234   :  { %v921_v22 = vmul.f32 0.35355338, %v911_v20  ;;  %947 = vmax.xlane.f32.xlu1 %v946_v21  ;;  %v920_v26 = vmul.f32 0.35355338, %v885_v24 }
 0x236   :  { %v933_v25 = vadd.f32 %v3832_v16, %v921_v22  ;;  %v932_v29 = vadd.f32 %v3832_v16, %v920_v26 }
 0x238   :  { %v955_v28 = vsel %vm705_vm8, %v933_v25, -inf  ;;  %v952_v32 = vsel %vm705_vm8, %v932_v29, -inf }
 0x239   :  { %944 = vmax.xlane.f32.xlu2 %v943_v27  ;;  %956 = vmax.xlane.f32.xlu0 %v955_v28 }
 0x241   :  { %953 = vmax.xlane.f32.xlu2 %v952_v32 }
 0x249   :  { %950 = vmax.xlane.f32.xlu2 %v949_v34 }
 0x297   :  { %v939_v38 = vpop.xlane.xlu1 %938 }
 0x298   :  { %v959_v41 = vsub.f32 %v927_v2, %v939_v38 }
 0x29a   :  { %v968_v44 = vmul.f32 1.442695, %v959_v41  ;;  %v3198_v41 = vld [vmem:[%s4276_s2 + $0x70] sm:$0xff] }
 0x29f   :  { %v936_v35 = vpop.xlane.xlu0 %935 }
 0x2a0   :  { %v958_v36 = vsub.f32 %v926_v6, %v936_v35 }
 0x2a2   :  { %v966_v37 = vmul.f32 1.442695, %v958_v36 }
 0x2a4   :  { %3474 = vpow2.f32 %v966_v37  ;;  %v942_v39 = vpop.xlane.xlu2 %941 }
 0x2a5   :  { %v960_v40 = vsub.f32 %v928_v14, %v942_v39 }
 0x2a7   :  { %v970_v42 = vmul.f32 1.442695, %v960_v40  ;;  %v948_v45 = vpop.xlane.xlu1 %947  ;;  %v3196_v40 = vld [vmem:[%s4276_s2 + $0x60] sm:$0xff] }
 0x2a8   :  { %v962_v53 = vsub.f32 %v930_v19, %v948_v45 }
 0x2a9   :  { %3476 = vpow2.f32 %v970_v42  ;;  %v3197_v42 = vld [vmem:[%s4276_s2 + $0x68] sm:$0xff] }
 0x2aa   :  { %v3475_v43 = vpop.eup %3474  ;;  %3478 = vpow2.f32 %v968_v44  ;;  %v974_v58 = vmul.f32 1.442695, %v962_v53 }
 0x2ab   :  { %v982_v46 = vsel %vm705_vm8, %v3475_v43, 0.0 }
 0x2ac   :  { %v945_v47 = vpop.xlane.xlu2 %944  ;;  %v957_v49 = vpop.xlane.xlu0 %956  ;;  %983 = vadd.xlane.f32.xlu2 %v982_v46 }
 0x2ad   :  { %v961_v50 = vsub.f32 %v929_v23, %v945_v47  ;;  %v965_v51 = vsub.f32 %v933_v25, %v957_v49 }
 0x2af   :  { %v3477_v52 = vpop.eup %3476  ;;  %v972_v54 = vmul.f32 1.442695, %v961_v50  ;;  %v980_v56 = vmul.f32 1.442695, %v965_v51 }
 0x2b0   :  { %v988_v57 = vsel %vm705_vm8, %v3477_v52, 0.0  ;;  %v3479_v60 = vpop.eup %3478 }
 0x2b1   :  { %3480 = vpow2.f32 %v972_v54  ;;  %989 = vadd.xlane.f32.xlu0 %v988_v57  ;;  %v985_v2 = vsel %vm705_vm8, %v3479_v60, 0.0 }
 0x2b2   :  { %3482 = vpow2.f32 %v980_v56 }
 0x2b3   :  { %3484 = vpow2.f32 %v974_v58 }
 0x2b4   :  { %v954_v59 = vpop.xlane.xlu2 %953 }
 0x2b5   :  { %v964_v61 = vsub.f32 %v932_v29, %v954_v59 }
 0x2b7   :  { %v3481_v62 = vpop.eup %3480  ;;  %v978_v0 = vmul.f32 1.442695, %v964_v61 }
 0x2b8   :  { %v3483_v1 = vpop.eup %3482  ;;  %v991_v3 = vsel %vm705_vm8, %v3481_v62, 0.0 }
 0x2b9   :  { %3486 = vpow2.f32 %v978_v0  ;;  %986 = vadd.xlane.f32.xlu0 %v985_v2  ;;  %v1003_v4 = vsel %vm705_vm8, %v3483_v1, 0.0  ;;  %992 = vadd.xlane.f32.xlu1 %v991_v3  ;;  %v3485_v6 = vpop.eup %3484  ;;  %v3442_v0 = vld [vmem:[%s4281_s7 + $0x2] ss:$0 sm:$0xff] }
 0x2ba   :  { %1004 = vadd.xlane.f32.xlu2 %v1003_v4  ;;  %v994_v12 = vsel %vm705_vm8, %v3485_v6, 0.0 }
 0x2bc   :  { %v951_v5 = vpop.xlane.xlu2 %950 }
 0x2bd   :  { %v963_v7 = vsub.f32 %v931_v33, %v951_v5 }
 0x2bf   :  { %v3487_v8 = vpop.eup %3486  ;;  %v976_v9 = vmul.f32 1.442695, %v963_v7 }
 0x2c0   :  { %v1000_v11 = vsel %vm705_vm8, %v3487_v8, 0.0 }
 0x2c1   :  { %3488 = vpow2.f32 %v976_v9  ;;  %1001 = vadd.xlane.f32.xlu1 %v1000_v11  ;;  %995 = vadd.xlane.f32.xlu0 %v994_v12 }
 0x2c7   :  { %v3489_v13 = vpop.eup %3488 }
 0x2c8   :  { %v997_v14 = vsel %vm705_vm8, %v3489_v13, 0.0 }
 0x2c9   :  { %998 = vadd.xlane.f32.xlu1 %v997_v14 }
 0x31f   :  { %v984_v15 = vpop.xlane.xlu2 %983 }
 0x320   :  { %3490 = vrcp.f32 %v984_v15 }
 0x324   :  { %v990_v17 = vpop.xlane.xlu0 %989 }
 0x325   :  { %3492 = vrcp.f32 %v990_v17 }
 0x326   :  { %v3491_v18 = vpop.eup %3490 }
 0x327   :  { %v1014_v19 = vmul.f32 %v3491_v18, %v3475_v43  ;;  %v3199_v43 = vld [vmem:[%s4276_s2 + $0x78] sm:$0xff] }
 0x329   :  { %3272 = vmatmul.msk.f32.vlgmr.msrb.gmra.mxu0 %vm705_vm8, %v1014_v19 }
 0x32a   :  { %1224 = vmatpush.msrb.mxu0 %v3196_v40 }
 0x32b   :  { %v3493_v20 = vpop.eup %3492 }
 0x32c   :  { %v1016_v21 = vmul.f32 %v3493_v20, %v3477_v52  ;;  %v987_v22 = vpop.xlane.xlu0 %986  ;;  %v993_v23 = vpop.xlane.xlu1 %992 }
 0x32d   :  { %3494 = vrcp.f32 %v987_v22  ;;  %v1005_v24 = vpop.xlane.xlu2 %1004 }
 0x32e   :  { %3274 = vmatmul.msk.f32.vlgmr.msrb.gmra.mxu2 %vm705_vm8, %v1016_v21  ;;  %3496 = vrcp.f32 %v993_v23 }
 0x32f   :  { %3498 = vrcp.f32 %v1005_v24  ;;  %1270 = vmatpush.msrb.mxu2 %v3198_v41 }
 0x333   :  { %v3495_v25 = vpop.eup %3494 }
 0x334   :  { %v1015_v26 = vmul.f32 %v3495_v25, %v3479_v60  ;;  %v996_v27 = vpop.xlane.xlu0 %995  ;;  %v1002_v28 = vpop.xlane.xlu1 %1001 }
 0x335   :  { %v3497_v29 = vpop.eup %3496  ;;  %3500 = vrcp.f32 %v996_v27 }
 0x336   :  { %v1017_v30 = vmul.f32 %v3497_v29, %v3481_v62  ;;  %3502 = vrcp.f32 %v1002_v28  ;;  %3273 = vmatmul.msk.f32.vlgmr.msra.gmra.mxu1 %vm705_vm8, %v1015_v26  ;;  %v3499_v31 = vpop.eup %3498 }
 0x337   :  { %v1021_v37 = vmul.f32 %v3499_v31, %v3483_v1  ;;  %1247 = vmatpush.msra.mxu1 %v3197_v42  ;;  %v1467_v31 = vld [vmem:[%s4278_s4 + $0x10] sm:$0xff] }
 0x338   :  { %3275 = vmatmul.msk.f32.vlgmr.msra.gmra.mxu3 %vm705_vm8, %v1017_v30 }
 0x339   :  { %1293 = vmatpush.msra.mxu3 %v3199_v43 }
 0x33b   :  { %v3501_v32 = vpop.eup %3500 }
 0x33c   :  { %v3503_v33 = vpop.eup %3502  ;;  %v1018_v34 = vmul.f32 %v3501_v32, %v3485_v6  ;;  %v999_v35 = vpop.xlane.xlu1 %998  ;;  %v1466_v32 = vld [vmem:[%s4278_s4 + $0x8] sm:$0xff] }
 0x33d   :  { %v1020_v36 = vmul.f32 %v3503_v33, %v3487_v8  ;;  %3504 = vrcp.f32 %v999_v35  ;;  %v1465_v33 = vld [vmem:[%s4278_s4] sm:$0xff] }
 0x33e   :  { %3276 = vmatmul.msk.f32.vlgmr.msra.gmra.mxu0 %vm705_vm8, %v1018_v34 }
 0x33f   :  { %3278 = vmatmul.msk.f32.vlgmr.msra.gmra.mxu2 %vm705_vm8, %v1020_v36  ;;  %1316 = vmatpush.msra.mxu0 %v3196_v40 }
 0x340   :  { %3279 = vmatmul.msk.f32.vlgmr.msrb.gmra.mxu3 %vm705_vm8, %v1021_v37  ;;  %1362 = vmatpush.msra.mxu2 %v3198_v41 }
 0x341   :  { %1385 = vmatpush.msrb.mxu3 %v3199_v43 }
 0x343   :  { %v3505_v38 = vpop.eup %3504 }
 0x344   :  { %v1019_v39 = vmul.f32 %v3505_v38, %v3489_v13 }
 0x346   :  { %3277 = vmatmul.msk.f32.vlgmr.msrb.gmra.mxu1 %vm705_vm8, %v1019_v39 }
 0x347   :  { %1339 = vmatpush.msrb.mxu1 %v3197_v42 }
 0x3a6   :  { %v1042_v44 = vpop.f32.mrf.mxu0 }
 0x3a7   :  { %3280 = vmatmul.msk.f32.vlgmr.msrb.gmra.mxu0 %vm705_vm8, %v1042_v44 }
 0x3b1   :  { %v1088_v45 = vpop.f32.mrf.mxu2 }
 0x3b2   :  { %3282 = vmatmul.msk.f32.vlgmr.msrb.gmra.mxu2 %vm705_vm8, %v1088_v45 }
 0x3b3   :  { %v1065_v46 = vpop.f32.mrf.mxu1 }
 0x3b4   :  { %3281 = vmatmul.msk.f32.vlgmr.msra.gmra.mxu1 %vm705_vm8, %v1065_v46 }
 0x3bb   :  { %v1111_v47 = vpop.f32.mrf.mxu3  ;;  %v1134_v49 = vpop.f32.mrf.mxu0 }
 0x3bc   :  { %3283 = vmatmul.msk.f32.vlgmr.msra.gmra.mxu3 %vm705_vm8, %v1111_v47  ;;  %3284 = vmatmul.msk.f32.vlgmr.msra.gmra.mxu0 %vm705_vm8, %v1134_v49  ;;  %v3443_v47 = vld [vmem:[%s4281_s7 + $0x4] ss:$0 sm:$0xff] }
 0x3c2   :  { %v1180_v50 = vpop.f32.mrf.mxu2 }
 0x3c3   :  { %v1203_v51 = vpop.f32.mrf.mxu3  ;;  %3286 = vmatmul.msk.f32.vlgmr.msra.gmra.mxu2 %vm705_vm8, %v1180_v50  ;;  %v1157_v52 = vpop.f32.mrf.mxu1 }
 0x3c4   :  { %3287 = vmatmul.msk.f32.vlgmr.msrb.gmra.mxu3 %vm705_vm8, %v1203_v51  ;;  %3285 = vmatmul.msk.f32.vlgmr.msrb.gmra.mxu1 %vm705_vm8, %v1157_v52 }
 0x424   :  { %v1226_v54 = vpop.f32.mrf.mxu0 }
 0x425   :  { %v1390_v58 = vsel %vm40_vm0, %v1226_v54, 0.0 }
 0x431   :  { %v1249_v53 = vpop.f32.mrf.mxu1 }
 0x432   :  { %v1391_v57 = vsel %vm40_vm0, %v1249_v53, 0.0  ;;  %v3444_v53 = vld [vmem:[%s4281_s7 + $0x5] ss:$0 sm:$0xff] }
 0x433   :  { %v1392_v60 = vadd.f32 %v1391_v57, %v1390_v58 }
 0x435   :  { %v1272_v56 = vpop.f32.mrf.mxu2 }
 0x436   :  { %v1393_v59 = vsel %vm40_vm0, %v1272_v56, 0.0 }
 0x437   :  { %v1394_v61 = vadd.f32 %v1393_v59, %v1392_v60 }
 0x439   :  { %v1318_v4 = vpop.f32.mrf.mxu0 }
 0x43a   :  { %v1397_v7 = vsel %vm40_vm0, %v1318_v4, 0.0  ;;  %v1524_v4 = vld [vmem:[%s4280_s6 + $0x20] sm:$0xff] }
 0x43f   :  { %v1295_v62 = vpop.f32.mrf.mxu3 }
 0x440   :  { %v1395_v1 = vsel %vm40_vm0, %v1295_v62, 0.0 }
 0x441   :  { %v1396_v2 = vadd.f32 %v1395_v1, %v1394_v61  ;;  %v1341_v3 = vpop.f32.mrf.mxu1  ;;  %v1527_v1 = vld [vmem:[%s4280_s6 + $0x38] sm:$0xff] }
 0x442   :  { %v1398_v6 = vsel %vm40_vm0, %v1341_v3, 0.0  ;;  %1546 = vmatpush.msra.mxu1 %v1527_v1  ;;  %v1525_v3 = vld [vmem:[%s4280_s6 + $0x28] sm:$0xff] }
 0x443   :  { %v1407_v5 = vadd.f32 %v3442_v0, %v1396_v2  ;;  %v1399_v9 = vadd.f32 %v1398_v6, %v1397_v7  ;;  %v1526_v2 = vld [vmem:[%s4280_s6 + $0x30] sm:$0xff]  ;;  %v1521_v7 = vld [vmem:[%s4280_s6 + $0x8] sm:$0xff] }
 0x444   :  { %1547 = vmatpush.msra.mxu1 %v1526_v2  ;;  %v1522_v6 = vld [vmem:[%s4280_s6 + $0x10] sm:$0xff] }
 0x445   :  { %v1409_v8 = vadd.f32 %v1407_v5, %v3681_v48  ;;  %v1523_v5 = vld [vmem:[%s4280_s6 + $0x18] sm:$0xff] }
 0x446   :  { %v1364_v11 = vpop.f32.mrf.mxu2  ;;  %1548 = vmatpush.msra.mxu1 %v1525_v3 }
 0x447   :  { %v1400_v12 = vsel %vm40_vm0, %v1364_v11, 0.0  ;;  %v1387_v13 = vpop.f32.mrf.mxu3  ;;  %v1411_v14 = vsel %vm40_vm0, %v1409_v8, 0.0 }
 0x448   :  { %v1401_v15 = vadd.f32 %v1400_v12, %v1399_v9  ;;  %1412 = vadd.xlane.f32.xlu2 %v1411_v14  ;;  %v1402_v17 = vsel %vm40_vm0, %v1387_v13, 0.0  ;;  %1549 = vmatpush.msra.mxu1 %v1524_v4  ;;  %v3445_v9 = vld [vmem:[%s4279_s5] ss:$0 sm:$0xff] }
 0x44a   :  { %v1403_v18 = vadd.f32 %v1402_v17, %v1401_v15  ;;  %1550 = vmatpush.msra.mxu1 %v1523_v5 }
 0x44c   :  { %v1408_v19 = vadd.f32 %v3442_v0, %v1403_v18  ;;  %1551 = vmatpush.msra.mxu1 %v1522_v6 }
 0x44e   :  { %v1410_v20 = vadd.f32 %v1408_v19, %v3698_v55  ;;  %v1468_v55 = vld [vmem:[%s4278_s4 + $0x18] sm:$0xff]  ;;  %1552 = vmatpush.msra.mxu1 %v1521_v7 }
 0x44f   :  { %1491 = vmatpush.msrb.mxu0 %v1468_v55 }
 0x450   :  { %v1414_v21 = vsel %vm40_vm0, %v1410_v20, 0.0 }
 0x451   :  { %1415 = vadd.xlane.f32.xlu0 %v1414_v21  ;;  %1492 = vmatpush.msrb.mxu0 %v1467_v31 }
 0x453   :  { %1493 = vmatpush.msrb.mxu0 %v1466_v32  ;;  %v3446_v32 = vld [vmem:[%s4281_s7 + $0x3] ss:$0 sm:$0xff] }
 0x455   :  { %1494 = vmatpush.msrb.mxu0 %v1465_v33 }
 0x4bb   :  { %v1413_v22 = vpop.xlane.xlu2 %1412 }
 0x4bc   :  { %v1417_v48 = vmul.f32 %v1413_v22, %v3644_v10 }
 0x4be   :  { %v1419_v23 = vsub.f32 %v1409_v8, %v1417_v48  ;;  %v1520_v8 = vld [vmem:[%s4280_s6] sm:$0xff] }
 0x4bf   :  { %1553 = vmatpush.msra.mxu1 %v1520_v8  ;;  %v3447_v8 = vld [vmem:[%s4281_s7 + $0x6] ss:$0 sm:$0xff] }
 0x4c0   :  { %v1421_v24 = vmul.f32 %v1419_v23, %v1419_v23 }
 0x4c2   :  { %v1423_v25 = vsel %vm40_vm0, %v1421_v24, 0.0 }
 0x4c3   :  { %1424 = vadd.xlane.f32.xlu1 %v1423_v25 }
 0x4c4   :  { %v1416_v26 = vpop.xlane.xlu0 %1415 }
 0x4c5   :  { %v1418_v27 = vmul.f32 %v1416_v26, %v3644_v10 }
 0x4c7   :  { %v1420_v28 = vsub.f32 %v1410_v20, %v1418_v27 }
 0x4c9   :  { %v1422_v29 = vmul.f32 %v1420_v28, %v1420_v28 }
 0x4cb   :  { %v1426_v30 = vsel %vm40_vm0, %v1422_v29, 0.0 }
 0x4cc   :  { %1427 = vadd.xlane.f32.xlu2 %v1426_v30 }
 0x536   :  { %v1425_v34 = vpop.xlane.xlu1 %1424 }
 0x537   :  { %v1429_v35 = vmul.f32 %v1425_v34, %v3644_v10 }
 0x539   :  { %v1431_v36 = vadd.f32 1e-12, %v1429_v35 }
 0x53b   :  { %3506 = vrsqrt.f32 %v1431_v36  ;;  %vm1439_vm10 = vweird.f32 %v1431_v36 }
 0x53f   :  { %v1428_v37 = vpop.xlane.xlu2 %1427 }
 0x540   :  { %v1430_v38 = vmul.f32 %v1428_v37, %v3644_v10 }
 0x541   :  { %v3507_v39 = vpop.eup %3506 }
 0x542   :  { %v1434_v40 = vmul.f32 %v3507_v39, %v1431_v36  ;;  %v1432_v41 = vadd.f32 1e-12, %v1430_v38  ;;  %vm1440_vm9 = vweird.f32 %v3507_v39 }
 0x543   :  { %vm1441_vm11 = vmor %vm1439_vm10, %vm1440_vm9 }
 0x544   :  { %v1435_v42 = vmul.f32 %v3507_v39, %v1434_v40  ;;  %3508 = vrsqrt.f32 %v1432_v41  ;;  %vm1449_vm13 = vweird.f32 %v1432_v41 }
 0x546   :  { %v1436_v43 = vmul.f32 0.5, %v1435_v42 }
 0x548   :  { %v1437_v44 = vsub.f32 1.5, %v1436_v43 }
 0x54a   :  { %v3509_v45 = vpop.eup %3508  ;;  %v1438_v46 = vmul.f32 %v3507_v39, %v1437_v44 }
 0x54b   :  { %v1444_v49 = vmul.f32 %v3509_v45, %v1432_v41  ;;  %vm1450_vm12 = vweird.f32 %v3509_v45 }
 0x54c   :  { %v1442_v50 = vsel %vm1441_vm11, %v3507_v39, %v1438_v46  ;;  %vm1451_vm14 = vmor %vm1449_vm13, %vm1450_vm12 }
 0x54d   :  { %v1453_v51 = vmul.f32 %v1442_v50, %v1419_v23  ;;  %v1445_v52 = vmul.f32 %v3509_v45, %v1444_v49 }
 0x54f   :  { %v1458_v54 = vmul.f32 %v3443_v47, %v1453_v51  ;;  %v1446_v56 = vmul.f32 0.5, %v1445_v52  ;;  %v3298_v52 = vld [vmem:[%s4276_s2 + $0x80] sm:$0xff] }
 0x550   :  { %3326 = vmatpush.xpose.msk.msrb.mxu2 %vm40_vm0, %v3298_v52  ;;  %3334 = vmatpush.xpose.msk.msra.mxu0 %vm40_vm0, %v3298_v52 }
 0x551   :  { %v1447_v57 = vsub.f32 1.5, %v1446_v56  ;;  %v1463_v58 = vadd.f32 %v3444_v53, %v1458_v54  ;;  %v3302_v54 = vld [vmem:[%s4276_s2 + $0xa0] sm:$0xff] }
 0x552   :  { %3342 = vmatpush.xpose.msk.msrb.mxu1 %vm40_vm0, %v3302_v54 }
 0x553   :  { %v1448_v59 = vmul.f32 %v3509_v45, %v1447_v57  ;;  %3288 = vmatmul.msk.f32.vlgmr.msrb.gmra.mxu0 %vm40_vm0, %v1463_v58 }
 0x555   :  { %v1452_v60 = vsel %vm1451_vm14, %v3509_v45, %v1448_v59  ;;  %v3301_v59 = vld [vmem:[%s4276_s2 + $0x98] sm:$0xff] }
 0x556   :  { %v1454_v61 = vmul.f32 %v1452_v60, %v1420_v28  ;;  %3340 = vmatpush.xpose.msk.msrb.mxu0 %vm40_vm0, %v3301_v59 }
 0x558   :  { %v1459_v62 = vmul.f32 %v3443_v47, %v1454_v61 }
 0x55a   :  { %v1464_v0 = vadd.f32 %v3444_v53, %v1459_v62  ;;  %v3299_v53 = vld [vmem:[%s4276_s2 + $0x88] sm:$0xff] }
 0x55b   :  { %3328 = vmatpush.xpose.msk.msra.mxu3 %vm40_vm0, %v3299_v53 }
 0x55c   :  { %3289 = vmatmul.msk.f32.gmra.mxu0 %vm40_vm0, %v1464_v0 }
 0x55f   :  { %3332 = vmatpush.xpose.msk.msrb.mxu3 %vm40_vm0, %v3301_v59 }
 0x5d0   :  { %v1496_v11 = vpop.f32.mrf.mxu0 }
 0x5d1   :  { %v1497_v12 = vadd.f32 %v3445_v9, %v1496_v11 }
 0x5d3   :  { %v1502_v13 = vmul.f32 %v1497_v12, %v1497_v12 }
 0x5d5   :  { %v1504_v14 = vmul.f32 %v1502_v13, %v1497_v12 }
 0x5d7   :  { %v1506_v15 = vmul.f32 0.044715, %v1504_v14 }
 0x5d9   :  { %v1508_v17 = vadd.f32 %v1506_v15, %v1497_v12  ;;  %v1499_v18 = vpop.f32.mrf.mxu0 }
 0x5da   :  { %v1500_v19 = vadd.f32 %v3445_v9, %v1499_v18 }
 0x5db   :  { %v1510_v20 = vmul.f32 0.7978846, %v1508_v17 }
 0x5dc   :  { %v1503_v21 = vmul.f32 %v1500_v19, %v1500_v19 }
 0x5dd   :  { %3510 = vtanh.f32 %v1510_v20  ;;  %v3306_v20 = vld [vmem:[%s4276_s2 + $0xc0] sm:$0xff] }
 0x5de   :  { %v1505_v22 = vmul.f32 %v1503_v21, %v1500_v19 }
 0x5e0   :  { %v1507_v48 = vmul.f32 0.044715, %v1505_v22 }
 0x5e2   :  { %v1509_v23 = vadd.f32 %v1507_v48, %v1500_v19 }
 0x5e3   :  { %v3511_v24 = vpop.eup %3510 }
 0x5e4   :  { %v1514_v25 = vadd.f32 1.0, %v3511_v24  ;;  %v1511_v26 = vmul.f32 0.7978846, %v1509_v23 }
 0x5e6   :  { %v1516_v27 = vmul.f32 0.5, %v1514_v25  ;;  %3512 = vtanh.f32 %v1511_v26  ;;  %v3303_v25 = vld [vmem:[%s4276_s2 + $0xa8] sm:$0xff]  ;;  %v3304_v26 = vld [vmem:[%s4276_s2 + $0xb0] sm:$0xff] }
 0x5e8   :  { %v1518_v28 = vmul.f32 %v1516_v27, %v1497_v12  ;;  %v3448_v12 = vld [vmem:[%s4281_s7 + $0x7] ss:$0 sm:$0xff]  ;;  %v3305_v27 = vld [vmem:[%s4276_s2 + $0xb8] sm:$0xff] }
 0x5ea   :  { %3290 = vmatmul.msk.f32.vlgmr.msra.gmra.mxu1 %vm1531_vm15, %v1518_v28  ;;  %v3307_v28 = vld [vmem:[%s4276_s2 + $0xc8] sm:$0xff] }
 0x5eb   :  { %3350 = vmatpush.xpose.msk.msra.mxu1 %vm40_vm0, %v3302_v54 }
 0x5ec   :  { %v3513_v29 = vpop.eup %3512 }
 0x5ed   :  { %v1515_v30 = vadd.f32 1.0, %v3513_v29  ;;  %v3308_v29 = vld [vmem:[%s4276_s2 + $0xd0] sm:$0xff] }
 0x5ef   :  { %v1517_v55 = vmul.f32 0.5, %v1515_v30  ;;  %v3309_v30 = vld [vmem:[%s4276_s2 + $0xd8] sm:$0xff] }
 0x5f1   :  { %v1519_v31 = vmul.f32 %v1517_v55, %v1500_v19  ;;  %v3449_v55 = vld [vmem:[%s4277_s3 + $0x10] ss:$0 sm:$0xff] }
 0x5f3   :  { %3291 = vmatmul.msk.f32.gmra.mxu1 %vm1531_vm15, %v1519_v31 }
 0x667   :  { %v1555_v33 = vpop.f32.mrf.mxu1 }
 0x668   :  { %v1556_v34 = vadd.f32 %v3446_v32, %v1555_v33  ;;  %v3450_v33 = vld [vmem:[%s4277_s3 + $0xc] ss:$0 sm:$0xff] }
 0x66a   :  { %v1561_v35 = vadd.f32 %v1556_v34, %v1463_v58  ;;  %v3300_v58 = vld [vmem:[%s4276_s2 + $0x90] sm:$0xff] }
 0x66b   :  { %3330 = vmatpush.xpose.msk.msra.mxu2 %vm40_vm0, %v3300_v58 }
 0x66c   :  { %v1563_v36 = vsel %vm40_vm0, %v1561_v35, 0.0 }
 0x66d   :  { %1564 = vadd.xlane.f32.xlu0 %v1563_v36 }
 0x670   :  { %v1558_v37 = vpop.f32.mrf.mxu1 }
 0x671   :  { %v1559_v38 = vadd.f32 %v3446_v32, %v1558_v37 }
 0x673   :  { %v1562_v39 = vadd.f32 %v1559_v38, %v1464_v0 }
 0x675   :  { %v1566_v40 = vsel %vm40_vm0, %v1562_v39, 0.0 }
 0x676   :  { %1567 = vadd.xlane.f32.xlu1 %v1566_v40 }
 0x6e0   :  { %v1565_v41 = vpop.xlane.xlu0 %1564 }
 0x6e1   :  { %v1569_v42 = vmul.f32 %v1565_v41, %v3644_v10 }
 0x6e3   :  { %v1571_v43 = vsub.f32 %v1561_v35, %v1569_v42  ;;  %v3454_v42 = vld [vmem:[%s4277_s3 + $0x14] ss:$0 sm:$0xff] }
 0x6e5   :  { %v1573_v44 = vmul.f32 %v1571_v43, %v1571_v43 }
 0x6e7   :  { %v1575_v45 = vsel %vm40_vm0, %v1573_v44, 0.0 }
 0x6e8   :  { %1576 = vadd.xlane.f32.xlu2 %v1575_v45 }
 0x6e9   :  { %v1568_v46 = vpop.xlane.xlu1 %1567 }
 0x6ea   :  { %v1570_v47 = vmul.f32 %v1568_v46, %v3644_v10 }
 0x6ec   :  { %v1572_v49 = vsub.f32 %v1562_v39, %v1570_v47 }
 0x6ee   :  { %v1574_v50 = vmul.f32 %v1572_v49, %v1572_v49 }
 0x6f0   :  { %v1578_v51 = vsel %vm40_vm0, %v1574_v50, 0.0  ;;  %v3455_v50 = vld [vmem:[%s4277_s3 + $0x13] ss:$0 sm:$0xff] }
 0x6f1   :  { %1579 = vadd.xlane.f32.xlu0 %v1578_v51  ;;  %v3453_v51 = vld [vmem:[%s4277_s3 + $0xf] ss:$0 sm:$0xff] }
 0x75b   :  { %v1577_v56 = vpop.xlane.xlu2 %1576 }
 0x75c   :  { %v1581_v57 = vmul.f32 %v1577_v56, %v3644_v10 }
 0x75e   :  { %v1583_v60 = vadd.f32 1e-12, %v1581_v57  ;;  %v3456_v57 = vld [vmem:[%s4277_s3 + $0x11] ss:$0 sm:$0xff] }
 0x760   :  { %3514 = vrsqrt.f32 %v1583_v60  ;;  %vm1591_vm2 = vweird.f32 %v1583_v60 }
 0x764   :  { %v1580_v61 = vpop.xlane.xlu0 %1579 }
 0x765   :  { %v1582_v62 = vmul.f32 %v1580_v61, %v3644_v10  ;;  %v3452_v61 = vld [vmem:[%s4277_s3 + $0xe] ss:$0 sm:$0xff] }
 0x766   :  { %v3515_v0 = vpop.eup %3514 }
 0x767   :  { %v1586_v1 = vmul.f32 %v3515_v0, %v1583_v60  ;;  %v1584_v2 = vadd.f32 1e-12, %v1582_v62  ;;  %vm1592_vm1 = vweird.f32 %v3515_v0  ;;  %v3451_v60 = vld [vmem:[%s4277_s3 + $0xd] ss:$0 sm:$0xff] }
 0x768   :  { %vm1593_vm3 = vmor %vm1591_vm2, %vm1592_vm1 }
 0x769   :  { %v1587_v3 = vmul.f32 %v3515_v0, %v1586_v1  ;;  %3516 = vrsqrt.f32 %v1584_v2  ;;  %vm1601_vm5 = vweird.f32 %v1584_v2 }
 0x76b   :  { %v1588_v4 = vmul.f32 0.5, %v1587_v3 }
 0x76d   :  { %v1589_v5 = vsub.f32 1.5, %v1588_v4 }
 0x76f   :  { %v3517_v6 = vpop.eup %3516  ;;  %v1590_v7 = vmul.f32 %v3515_v0, %v1589_v5 }
 0x770   :  { %v1596_v9 = vmul.f32 %v3517_v6, %v1584_v2  ;;  %vm1602_vm4 = vweird.f32 %v3517_v6 }
 0x771   :  { %v1594_v11 = vsel %vm1593_vm3, %v3515_v0, %v1590_v7  ;;  %vm1603_vm6 = vmor %vm1601_vm5, %vm1602_vm4  ;;  %vm3139_vm4 = vcmask 130048   ;;  %vm3163_vm5 = vcmask 254976  }
 0x772   :  { %v1605_v13 = vmul.f32 %v1594_v11, %v1571_v43  ;;  %v1597_v14 = vmul.f32 %v3517_v6, %v1596_v9  ;;  %v3458_v11 = vld [vmem:[%s4277_s3 + $0x17] ss:$0 sm:$0xff] }
 0x774   :  { %v1610_v15 = vmul.f32 %v3447_v8, %v1605_v13  ;;  %v1598_v17 = vmul.f32 0.5, %v1597_v14 }
 0x776   :  { %v3991_v18 = vadd.f32 %v3448_v12, %v1610_v15  ;;  %v1599_v19 = vsub.f32 1.5, %v1598_v17 }
 0x778   :  { %v1600_v21 = vmul.f32 %v3517_v6, %v1599_v19  ;;  %3327 = vmatmul.msk.f32.vlgmr.msrb.gmra.mxu2 %vm40_vm0, %v3991_v18  ;;  %3329 = vmatmul.msk.f32.vlgmr.msra.gmra.mxu3 %vm40_vm0, %v3991_v18 }
 0x779   :  { %3343 = vmatmul.msk.f32.vlgmr.msrb.gmra.mxu1 %vm40_vm0, %v3991_v18  ;;  %3336 = vmatpush.xpose.msk.msrb.mxu2 %vm40_vm0, %v3299_v53 }
 0x77a   :  { %v1604_v22 = vsel %vm1603_vm6, %v3517_v6, %v1600_v21  ;;  %3338 = vmatpush.xpose.msk.msra.mxu3 %vm40_vm0, %v3300_v58  ;;  %3358 = vmatpush.xpose.msk.msrb.mxu1 %vm40_vm0, %v3306_v20  ;;  %v3457_v58 = vld [vmem:[%s4277_s3 + $0x12] ss:$0 sm:$0xff]  ;;  %v3460_v21 = vld [vmem:[%s4277_s3 + $0x16] ss:$0 sm:$0xff] }
 0x77b   :  { %v1606_v48 = vmul.f32 %v1604_v22, %v1572_v49 }
 0x77d   :  { %v1611_v23 = vmul.f32 %v3447_v8, %v1606_v48 }
 0x77f   :  { %v4005_v24 = vadd.f32 %v3448_v12, %v1611_v23 }
 0x780   :  { %3331 = vmatmul.msk.f32.vlgmr.msra.gmra.mxu2 %vm40_vm0, %v3991_v18  ;;  %3333 = vmatmul.msk.f32.vlgmr.msrb.gmra.mxu3 %vm40_vm0, %v3991_v18 }
 0x781   :  { %3335 = vmatmul.msk.f32.vlgmr.msra.gmra.mxu0 %vm40_vm0, %v4005_v24  ;;  %3351 = vmatmul.msk.f32.vlgmr.msra.gmra.mxu1 %vm40_vm0, %v4005_v24 }
 0x782   :  { %3344 = vmatpush.xpose.msk.msra.mxu2 %vm40_vm0, %v3303_v25  ;;  %3346 = vmatpush.xpose.msk.msrb.mxu3 %vm40_vm0, %v3304_v26 }
 0x783   :  { %3348 = vmatpush.xpose.msk.msra.mxu0 %vm40_vm0, %v3305_v27  ;;  %3366 = vmatpush.xpose.msk.msra.mxu1 %vm40_vm0, %v3306_v20  ;;  %v3459_v20 = vld [vmem:[%s4277_s3 + $0x15] ss:$0 sm:$0xff] }
 0x788   :  { %3337 = vmatmul.msk.f32.vlgmr.msrb.gmra.mxu2 %vm40_vm0, %v4005_v24  ;;  %3339 = vmatmul.msk.f32.vlgmr.msra.gmra.mxu3 %vm40_vm0, %v4005_v24 }
 0x789   :  { %3341 = vmatmul.msk.f32.vlgmr.msrb.gmra.mxu0 %vm40_vm0, %v4005_v24  ;;  %3359 = vmatmul.msk.f32.vlgmr.msrb.gmra.mxu1 %vm40_vm0, %v3991_v18 }
 0x78a   :  { %3352 = vmatpush.xpose.msk.msrb.mxu2 %vm40_vm0, %v3303_v25  ;;  %3354 = vmatpush.xpose.msk.msra.mxu3 %vm40_vm0, %v3304_v26 }
 0x78b   :  { %3356 = vmatpush.xpose.msk.msrb.mxu0 %vm40_vm0, %v3305_v27 }
 0x790   :  { %3345 = vmatmul.msk.f32.vlgmr.msra.gmra.mxu2 %vm40_vm0, %v3991_v18  ;;  %3347 = vmatmul.msk.f32.vlgmr.msrb.gmra.mxu3 %vm40_vm0, %v3991_v18 }
 0x791   :  { %3349 = vmatmul.msk.f32.vlgmr.msra.gmra.mxu0 %vm40_vm0, %v3991_v18  ;;  %3367 = vmatmul.msk.f32.vlgmr.msra.gmra.mxu1 %vm40_vm0, %v4005_v24 }
 0x792   :  { %3360 = vmatpush.xpose.msk.msra.mxu2 %vm40_vm0, %v3307_v28  ;;  %3362 = vmatpush.xpose.msk.msrb.mxu3 %vm40_vm0, %v3308_v29 }
 0x793   :  { %3364 = vmatpush.xpose.msk.msra.mxu0 %vm40_vm0, %v3309_v30 }
 0x798   :  { %3353 = vmatmul.msk.f32.vlgmr.msrb.gmra.mxu2 %vm40_vm0, %v4005_v24  ;;  %3355 = vmatmul.msk.f32.vlgmr.msra.gmra.mxu3 %vm40_vm0, %v4005_v24 }
 0x799   :  { %3357 = vmatmul.msk.f32.vlgmr.msrb.gmra.mxu0 %vm40_vm0, %v4005_v24  ;;  %3368 = vmatpush.xpose.msk.msrb.mxu2 %vm40_vm0, %v3307_v28 }
 0x79a   :  { %3370 = vmatpush.xpose.msk.msra.mxu3 %vm40_vm0, %v3308_v29  ;;  %3372 = vmatpush.xpose.msk.msrb.mxu0 %vm40_vm0, %v3309_v30 }
 0x7a0   :  { %3361 = vmatmul.msk.f32.vlgmr.msra.gmra.mxu2 %vm40_vm0, %v3991_v18  ;;  %3363 = vmatmul.msk.f32.vlgmr.msrb.gmra.mxu3 %vm40_vm0, %v3991_v18 }
 0x7a1   :  { %3365 = vmatmul.msk.f32.vlgmr.msra.gmra.mxu0 %vm40_vm0, %v3991_v18 }
 0x7a8   :  { %3369 = vmatmul.msk.f32.vlgmr.msrb.gmra.mxu2 %vm40_vm0, %v4005_v24  ;;  %3371 = vmatmul.msk.f32.vlgmr.msra.gmra.mxu3 %vm40_vm0, %v4005_v24 }
 0x7a9   :  { %3373 = vmatmul.msk.f32.vlgmr.msrb.gmra.mxu0 %vm40_vm0, %v4005_v24 }
 0x7f6   :  { %v1886_v31 = vpop.f32.mrf.mxu1 }
 0x7f7   :  { %v1887_v32 = vadd.f32 %v3449_v55, %v1886_v31 }
 0x7f9   :  { %3374 = vmatpush.xpose.msk.msrb.mxu1 %vm705_vm8, %v1887_v32 }
 0x7fb   :  { %v1699_v34 = vpop.f32.mrf.mxu2  ;;  %v1722_v35 = vpop.f32.mrf.mxu3 }
 0x7fc   :  { %v1700_v36 = vadd.f32 %v3450_v33, %v1699_v34  ;;  %v1723_v4 = vadd.f32 %v3451_v60, %v1722_v35 }
 0x7fe   :  { %3375 = vmatmul.msk.f32.vlgmr.msrb.gmra.mxu1 %vm705_vm8, %v1700_v36  ;;  %v1791_v37 = vpop.f32.mrf.mxu0  ;;  %v1975_v38 = vpop.f32.mrf.mxu1 }
 0x7ff   :  { %v1976_v39 = vadd.f32 %v3449_v55, %v1975_v38  ;;  %v1792_v43 = vadd.f32 %v3450_v33, %v1791_v37 }
 0x801   :  { %3382 = vmatpush.xpose.msk.msra.mxu1 %vm705_vm8, %v1976_v39 }
 0x803   :  { %v1745_v40 = vpop.f32.mrf.mxu2  ;;  %v1768_v41 = vpop.f32.mrf.mxu3 }
 0x804   :  { %v1769_v59 = vadd.f32 %v3453_v51, %v1768_v41  ;;  %v1746_v5 = vadd.f32 %v3452_v61, %v1745_v40 }
 0x806   :  { %3383 = vmatmul.msk.f32.vlgmr.msra.gmra.mxu1 %vm705_vm8, %v1792_v43  ;;  %v1851_v44 = vpop.f32.mrf.mxu0  ;;  %v2070_v45 = vpop.f32.mrf.mxu1 }
 0x807   :  { %v2071_v46 = vadd.f32 %v3454_v42, %v2070_v45  ;;  %v1852_v7 = vadd.f32 %v3453_v51, %v1851_v44 }
 0x809   :  { %2552 = vmatpush.msrb.mxu1 %v2071_v46 }
 0x80b   :  { %v1811_v47 = vpop.f32.mrf.mxu2  ;;  %v1831_v49 = vpop.f32.mrf.mxu3 }
 0x80c   :  { %v1812_v15 = vadd.f32 %v3451_v60, %v1811_v47  ;;  %v1832_v17 = vadd.f32 %v3452_v61, %v1831_v49 }
 0x80e   :  { %v1955_v52 = vpop.f32.mrf.mxu0  ;;  %v2159_v53 = vpop.f32.mrf.mxu1 }
 0x80f   :  { %v1956_v54 = vadd.f32 %v3455_v50, %v1955_v52  ;;  %v2160_v56 = vadd.f32 %v3454_v42, %v2159_v53 }
 0x811   :  { %3380 = vmatpush.xpose.msk.msra.mxu0 %vm705_vm8, %v1956_v54  ;;  %2644 = vmatpush.msra.mxu1 %v2160_v56 }
 0x813   :  { %v1909_v62 = vpop.f32.mrf.mxu2  ;;  %v1932_v0 = vpop.f32.mrf.mxu3 }
 0x814   :  { %v1910_v1 = vadd.f32 %v3456_v57, %v1909_v62  ;;  %v1933_v2 = vadd.f32 %v3457_v58, %v1932_v0  ;;  %3381 = vmatmul.msk.f32.vlgmr.msra.gmra.mxu0 %vm705_vm8, %v1769_v59 }
 0x816   :  { %3376 = vmatpush.xpose.msk.msra.mxu2 %vm705_vm8, %v1910_v1  ;;  %3378 = vmatpush.xpose.msk.msrb.mxu3 %vm705_vm8, %v1933_v2  ;;  %v2035_v3 = vpop.f32.mrf.mxu0 }
 0x817   :  { %v2036_v6 = vadd.f32 %v3455_v50, %v2035_v3 }
 0x819   :  { %3377 = vmatmul.msk.f32.vlgmr.msra.gmra.mxu2 %vm705_vm8, %v1723_v4  ;;  %3379 = vmatmul.msk.f32.vlgmr.msrb.gmra.mxu3 %vm705_vm8, %v1746_v5 }
 0x81a   :  { %3388 = vmatpush.xpose.msk.msrb.mxu0 %vm705_vm8, %v2036_v6 }
 0x81b   :  { %v1995_v8 = vpop.f32.mrf.mxu2  ;;  %v2015_v9 = vpop.f32.mrf.mxu3 }
 0x81c   :  { %v1996_v12 = vadd.f32 %v3456_v57, %v1995_v8  ;;  %v2016_v13 = vadd.f32 %v3457_v58, %v2015_v9 }
 0x81d   :  { %3389 = vmatmul.msk.f32.vlgmr.msrb.gmra.mxu0 %vm705_vm8, %v1852_v7 }
 0x81e   :  { %3384 = vmatpush.xpose.msk.msrb.mxu2 %vm705_vm8, %v1996_v12  ;;  %3386 = vmatpush.xpose.msk.msra.mxu3 %vm705_vm8, %v2016_v13  ;;  %v2139_v14 = vpop.f32.mrf.mxu0 }
 0x81f   :  { %v2140_v19 = vadd.f32 %v3458_v11, %v2139_v14 }
 0x821   :  { %3385 = vmatmul.msk.f32.vlgmr.msrb.gmra.mxu2 %vm705_vm8, %v1812_v15  ;;  %3387 = vmatmul.msk.f32.vlgmr.msra.gmra.mxu3 %vm705_vm8, %v1832_v17 }
 0x822   :  { %2621 = vmatpush.msra.mxu0 %v2140_v19 }
 0x823   :  { %v2093_v22 = vpop.f32.mrf.mxu2  ;;  %v2116_v48 = vpop.f32.mrf.mxu3 }
 0x824   :  { %v2094_v23 = vadd.f32 %v3459_v20, %v2093_v22  ;;  %v2117_v25 = vadd.f32 %v3460_v21, %v2116_v48 }
 0x826   :  { %2575 = vmatpush.msra.mxu2 %v2094_v23  ;;  %2598 = vmatpush.msrb.mxu3 %v2117_v25  ;;  %v2219_v26 = vpop.f32.mrf.mxu0 }
 0x827   :  { %v2220_v27 = vadd.f32 %v3458_v11, %v2219_v26 }
 0x829   :  { %2713 = vmatpush.msrb.mxu0 %v2220_v27 }
 0x82b   :  { %v2179_v28 = vpop.f32.mrf.mxu2  ;;  %v2199_v29 = vpop.f32.mrf.mxu3 }
 0x82c   :  { %v2180_v30 = vadd.f32 %v3459_v20, %v2179_v28  ;;  %v2200_v55 = vadd.f32 %v3460_v21, %v2199_v29 }
 0x82e   :  { %2667 = vmatpush.msrb.mxu2 %v2180_v30  ;;  %2690 = vmatpush.msra.mxu3 %v2200_v55 }
 0x87b   :  { %v2245_v31 = vpop.f32.mrf.mxu1 }
 0x87c   :  { %v2430_v39 = vmul.f32 0.35355338, %v2245_v31 }
 0x87e   :  { %v2438_v44 = vadd.f32 %v2430_v39, %v3825_v63 }
 0x880   :  { %v2446_v52 = vsel %vm705_vm8, %v2438_v44, -inf }
 0x883   :  { %v2349_v47 = vpop.f32.mrf.mxu1 }
 0x884   :  { %v2434_v53 = vmul.f32 0.35355338, %v2349_v47 }
 0x886   :  { %v2442_v60 = vadd.f32 %v2434_v53, %v3832_v16 }
 0x888   :  { %v2458_v0 = vsel %vm705_vm8, %v2442_v60, -inf }
 0x891   :  { %v2323_v32 = vpop.f32.mrf.mxu0 }
 0x892   :  { %v2433_v58 = vmul.f32 0.35355338, %v2323_v32 }
 0x894   :  { %v2441_v61 = vadd.f32 %v2433_v58, %v3825_v63 }
 0x896   :  { %v2455_v1 = vsel %vm705_vm8, %v2441_v61, -inf }
 0x89a   :  { %v2427_v49 = vpop.f32.mrf.mxu0 }
 0x89b   :  { %v2437_v54 = vmul.f32 0.35355338, %v2427_v49 }
 0x89c   :  { %v2271_v33 = vpop.f32.mrf.mxu2  ;;  %v2297_v34 = vpop.f32.mrf.mxu3 }
 0x89d   :  { %v2431_v35 = vmul.f32 0.35355338, %v2271_v33  ;;  %v2432_v36 = vmul.f32 0.35355338, %v2297_v34  ;;  %v2445_v59 = vadd.f32 %v2437_v54, %v3832_v16 }
 0x89f   :  { %v2440_v37 = vadd.f32 %v2432_v36, %v3825_v63  ;;  %v2439_v38 = vadd.f32 %v2431_v35, %v3825_v63  ;;  %v2467_v62 = vsel %vm705_vm8, %v2445_v59, -inf }
 0x8a1   :  { %v2452_v40 = vsel %vm705_vm8, %v2440_v37, -inf  ;;  %v2449_v41 = vsel %vm705_vm8, %v2439_v38, -inf }
 0x8a2   :  { %2453 = vmax.xlane.f32.xlu2 %v2452_v40  ;;  %2450 = vmax.xlane.f32.xlu1 %v2449_v41 }
 0x8a4   :  { %v2375_v42 = vpop.f32.mrf.mxu2  ;;  %v2401_v43 = vpop.f32.mrf.mxu3 }
 0x8a5   :  { %v2435_v45 = vmul.f32 0.35355338, %v2375_v42  ;;  %v2436_v46 = vmul.f32 0.35355338, %v2401_v43 }
 0x8a7   :  { %v2444_v50 = vadd.f32 %v2436_v46, %v3832_v16  ;;  %v2443_v51 = vadd.f32 %v2435_v45, %v3832_v16 }
 0x8a9   :  { %v2464_v56 = vsel %vm705_vm8, %v2444_v50, -inf  ;;  %v2461_v57 = vsel %vm705_vm8, %v2443_v51, -inf }
 0x8aa   :  { %2447 = vmax.xlane.f32.xlu2 %v2446_v52  ;;  %2465 = vmax.xlane.f32.xlu1 %v2464_v56 }
 0x8ab   :  { %2462 = vmax.xlane.f32.xlu0 %v2461_v57 }
 0x8b2   :  { %2468 = vmax.xlane.f32.xlu2 %v2467_v62  ;;  %2459 = vmax.xlane.f32.xlu1 %v2458_v0 }
 0x8b3   :  { %2456 = vmax.xlane.f32.xlu0 %v2455_v1 }
 0x915   :  { %v2454_v2 = vpop.xlane.xlu2 %2453  ;;  %v2451_v3 = vpop.xlane.xlu1 %2450 }
 0x916   :  { %v2472_v4 = vsub.f32 %v2440_v37, %v2454_v2  ;;  %v2471_v5 = vsub.f32 %v2439_v38, %v2451_v3 }
 0x918   :  { %v2482_v6 = vmul.f32 1.442695, %v2472_v4  ;;  %v2480_v7 = vmul.f32 1.442695, %v2471_v5 }
 0x91a   :  { %3518 = vpow2.f32 %v2482_v6  ;;  %v3312_v6 = vld [vmem:[%s4276_s2 + $0xf0] sm:$0xff] }
 0x91b   :  { %3520 = vpow2.f32 %v2480_v7  ;;  %v3310_v7 = vld [vmem:[%s4276_s2 + $0xe0] sm:$0xff] }
 0x91d   :  { %v2448_v16 = vpop.xlane.xlu2 %2447  ;;  %v2466_v8 = vpop.xlane.xlu1 %2465 }
 0x91e   :  { %v2470_v63 = vsub.f32 %v2438_v44, %v2448_v16  ;;  %v2476_v9 = vsub.f32 %v2444_v50, %v2466_v8  ;;  %v2463_v11 = vpop.xlane.xlu0 %2462  ;;  %v3313_v16 = vld [vmem:[%s4276_s2 + $0xf8] sm:$0xff] }
 0x91f   :  { %v2475_v12 = vsub.f32 %v2443_v51, %v2463_v11  ;;  %v3311_v51 = vld [vmem:[%s4276_s2 + $0xe8] sm:$0xff] }
 0x920   :  { %v3519_v13 = vpop.eup %3518  ;;  %v2478_v14 = vmul.f32 1.442695, %v2470_v63  ;;  %v2490_v15 = vmul.f32 1.442695, %v2476_v9 }
 0x921   :  { %v3521_v17 = vpop.eup %3520  ;;  %v2488_v19 = vmul.f32 1.442695, %v2475_v12  ;;  %v2500_v20 = vsel %vm705_vm8, %v3519_v13, 0.0 }
 0x922   :  { %3522 = vpow2.f32 %v2478_v14  ;;  %v2497_v21 = vsel %vm705_vm8, %v3521_v17, 0.0  ;;  %2501 = vadd.xlane.f32.xlu1 %v2500_v20 }
 0x923   :  { %3524 = vpow2.f32 %v2490_v15  ;;  %2498 = vadd.xlane.f32.xlu0 %v2497_v21 }
 0x924   :  { %3526 = vpow2.f32 %v2488_v19 }
 0x925   :  { %v2469_v22 = vpop.xlane.xlu2 %2468  ;;  %v2460_v48 = vpop.xlane.xlu1 %2459 }
 0x926   :  { %v2457_v23 = vpop.xlane.xlu0 %2456  ;;  %v2477_v25 = vsub.f32 %v2445_v59, %v2469_v22  ;;  %v2474_v26 = vsub.f32 %v2442_v60, %v2460_v48 }
 0x927   :  { %v2473_v27 = vsub.f32 %v2441_v61, %v2457_v23 }
 0x928   :  { %v3523_v28 = vpop.eup %3522  ;;  %v2492_v29 = vmul.f32 1.442695, %v2477_v25  ;;  %v2486_v30 = vmul.f32 1.442695, %v2474_v26 }
 0x929   :  { %v3525_v55 = vpop.eup %3524  ;;  %v2484_v31 = vmul.f32 1.442695, %v2473_v27  ;;  %v2494_v32 = vsel %vm705_vm8, %v3523_v28, 0.0  ;;  %v3461_v27 = vld [vmem:[%s4281_s7 + $0x8] ss:$0 sm:$0xff] }
 0x92a   :  { %v3527_v33 = vpop.eup %3526  ;;  %3528 = vpow2.f32 %v2492_v29  ;;  %v2512_v34 = vsel %vm705_vm8, %v3525_v55, 0.0  ;;  %2495 = vadd.xlane.f32.xlu1 %v2494_v32 }
 0x92b   :  { %3530 = vpow2.f32 %v2484_v31  ;;  %2513 = vadd.xlane.f32.xlu0 %v2512_v34  ;;  %v2509_v35 = vsel %vm705_vm8, %v3527_v33, 0.0 }
 0x92c   :  { %3532 = vpow2.f32 %v2486_v30  ;;  %2510 = vadd.xlane.f32.xlu2 %v2509_v35 }
 0x930   :  { %v3529_v36 = vpop.eup %3528 }
 0x931   :  { %v3531_v37 = vpop.eup %3530  ;;  %v2515_v38 = vsel %vm705_vm8, %v3529_v36, 0.0 }
 0x932   :  { %v3533_v39 = vpop.eup %3532  ;;  %v2503_v40 = vsel %vm705_vm8, %v3531_v37, 0.0  ;;  %2516 = vadd.xlane.f32.xlu1 %v2515_v38 }
 0x933   :  { %v2506_v41 = vsel %vm705_vm8, %v3533_v39, 0.0 }
 0x934   :  { %2504 = vadd.xlane.f32.xlu2 %v2503_v40  ;;  %2507 = vadd.xlane.f32.xlu0 %v2506_v41 }
 0x995   :  { %v2502_v42 = vpop.xlane.xlu1 %2501 }
 0x996   :  { %v2499_v43 = vpop.xlane.xlu0 %2498  ;;  %3534 = vrcp.f32 %v2502_v42 }
 0x997   :  { %3536 = vrcp.f32 %v2499_v43 }
 0x99c   :  { %v3535_v44 = vpop.eup %3534 }
 0x99d   :  { %v3537_v45 = vpop.eup %3536  ;;  %v2528_v46 = vmul.f32 %v3535_v44, %v3519_v13  ;;  %v2496_v47 = vpop.xlane.xlu1 %2495 }
 0x99e   :  { %v2527_v49 = vmul.f32 %v3537_v45, %v3521_v17  ;;  %v2514_v50 = vpop.xlane.xlu0 %2513  ;;  %3538 = vrcp.f32 %v2496_v47 }
 0x99f   :  { %3540 = vrcp.f32 %v2514_v50  ;;  %v2511_v52 = vpop.xlane.xlu2 %2510  ;;  %3392 = vmatmul.msk.f32.vlgmr.msrb.gmra.mxu3 %vm705_vm8, %v2528_v46 }
 0x9a0   :  { %3542 = vrcp.f32 %v2511_v52  ;;  %3391 = vmatmul.msk.f32.vlgmr.msra.gmra.mxu2 %vm705_vm8, %v2527_v49  ;;  %2782 = vmatpush.msrb.mxu3 %v3312_v6 }
 0x9a1   :  { %2759 = vmatpush.msra.mxu2 %v3311_v51 }
 0x9a4   :  { %v3539_v53 = vpop.eup %3538 }
 0x9a5   :  { %v3541_v54 = vpop.eup %3540  ;;  %v2526_v56 = vmul.f32 %v3539_v53, %v3523_v28  ;;  %v2517_v62 = vpop.xlane.xlu1 %2516 }
 0x9a6   :  { %v3543_v57 = vpop.eup %3542  ;;  %v2532_v58 = vmul.f32 %v3541_v54, %v3525_v55 }
 0x9a7   :  { %v2531_v59 = vmul.f32 %v3543_v57, %v3527_v33  ;;  %v2505_v60 = vpop.xlane.xlu2 %2504  ;;  %v2508_v61 = vpop.xlane.xlu0 %2507  ;;  %3390 = vmatmul.msk.f32.vlgmr.msrb.gmra.mxu1 %vm705_vm8, %v2526_v56  ;;  %v3408_v57 = vld [vmem:[%s4278_s4 + $0x30] sm:$0xff] }
 0x9a8   :  { %3544 = vrcp.f32 %v2505_v60  ;;  %3396 = vmatmul.msk.f32.vlgmr.msra.gmra.mxu3 %vm705_vm8, %v2532_v58  ;;  %2736 = vmatpush.msrb.mxu1 %v3310_v7  ;;  %v3407_v58 = vld [vmem:[%s4278_s4 + $0x28] sm:$0xff] }
 0x9a9   :  { %3546 = vrcp.f32 %v2508_v61  ;;  %3395 = vmatmul.msk.f32.vlgmr.msrb.gmra.mxu2 %vm705_vm8, %v2531_v59  ;;  %2874 = vmatpush.msra.mxu3 %v3312_v6  ;;  %v3406_v59 = vld [vmem:[%s4278_s4 + $0x20] sm:$0xff] }
 0x9aa   :  { %2851 = vmatpush.msrb.mxu2 %v3311_v51  ;;  %3548 = vrcp.f32 %v2517_v62 }
 0x9ae   :  { %v3545_v0 = vpop.eup %3544 }
 0x9af   :  { %v3547_v1 = vpop.eup %3546  ;;  %v2529_v2 = vmul.f32 %v3545_v0, %v3531_v37 }
 0x9b0   :  { %v2530_v3 = vmul.f32 %v3547_v1, %v3533_v39  ;;  %v3549_v4 = vpop.eup %3548 }
 0x9b1   :  { %3393 = vmatmul.msk.f32.vlgmr.msra.gmra.mxu0 %vm705_vm8, %v2529_v2  ;;  %v2533_v5 = vmul.f32 %v3549_v4, %v3529_v36 }
 0x9b2   :  { %3394 = vmatmul.msk.f32.vlgmr.msra.gmra.mxu1 %vm705_vm8, %v2530_v3  ;;  %2805 = vmatpush.msra.mxu0 %v3313_v16 }
 0x9b3   :  { %2828 = vmatpush.msra.mxu1 %v3310_v7 }
 0x9b9   :  { %3397 = vmatmul.msk.f32.vlgmr.msrb.gmra.mxu0 %vm705_vm8, %v2533_v5 }
 0x9ba   :  { %2897 = vmatpush.msrb.mxu0 %v3313_v16 }
 0xa22   :  { %v2600_v8 = vpop.f32.mrf.mxu3 }
 0xa23   :  { %v2577_v63 = vpop.f32.mrf.mxu2  ;;  %3400 = vmatmul.msk.f32.vlgmr.msrb.gmra.mxu3 %vm705_vm8, %v2600_v8 }
 0xa24   :  { %3399 = vmatmul.msk.f32.vlgmr.msra.gmra.mxu2 %vm705_vm8, %v2577_v63  ;;  %v2554_v9 = vpop.f32.mrf.mxu1 }
 0xa25   :  { %3398 = vmatmul.msk.f32.vlgmr.msrb.gmra.mxu1 %vm705_vm8, %v2554_v9  ;;  %v3462_v9 = vld [vmem:[%s4281_s7 + $0xa] ss:$0 sm:$0xff] }
 0xa2b   :  { %v2692_v11 = vpop.f32.mrf.mxu3 }
 0xa2c   :  { %v2669_v12 = vpop.f32.mrf.mxu2  ;;  %3404 = vmatmul.msk.f32.vlgmr.msra.gmra.mxu3 %vm705_vm8, %v2692_v11 }
 0xa2d   :  { %3403 = vmatmul.msk.f32.vlgmr.msrb.gmra.mxu2 %vm705_vm8, %v2669_v12 }
 0xa2e   :  { %v2623_v13 = vpop.f32.mrf.mxu0 }
 0xa2f   :  { %v2646_v14 = vpop.f32.mrf.mxu1  ;;  %3401 = vmatmul.msk.f32.vlgmr.msra.gmra.mxu0 %vm705_vm8, %v2623_v13  ;;  %v3463_v13 = vld [vmem:[%s4281_s7 + $0xb] ss:$0 sm:$0xff] }
 0xa30   :  { %3402 = vmatmul.msk.f32.vlgmr.msra.gmra.mxu1 %vm705_vm8, %v2646_v14 }
 0xa36   :  { %v2715_v15 = vpop.f32.mrf.mxu0 }
 0xa37   :  { %3405 = vmatmul.msk.f32.vlgmr.msrb.gmra.mxu0 %vm705_vm8, %v2715_v15 }
 0xaa2   :  { %v2738_v17 = vpop.f32.mrf.mxu1 }
 0xaa3   :  { %v2902_v21 = vsel %vm40_vm0, %v2738_v17, 0.0 }
 0xaa6   :  { %v2784_v19 = vpop.f32.mrf.mxu3 }
 0xaa7   :  { %v2761_v20 = vpop.f32.mrf.mxu2  ;;  %v2905_v23 = vsel %vm40_vm0, %v2784_v19, 0.0 }
 0xaa8   :  { %v2903_v22 = vsel %vm40_vm0, %v2761_v20, 0.0 }
 0xaa9   :  { %v2904_v48 = vadd.f32 %v2903_v22, %v2902_v21 }
 0xaab   :  { %v2906_v25 = vadd.f32 %v2905_v23, %v2904_v48 }
 0xaac   :  { %v2807_v26 = vpop.f32.mrf.mxu0 }
 0xaad   :  { %v2907_v28 = vsel %vm40_vm0, %v2807_v26, 0.0  ;;  %v2830_v30 = vpop.f32.mrf.mxu1  ;;  %v3420_v26 = vld [vmem:[%s4280_s6 + $0x78] sm:$0xff] }
 0xaae   :  { %v2908_v29 = vadd.f32 %v2907_v28, %v2906_v25  ;;  %v2909_v33 = vsel %vm40_vm0, %v2830_v30, 0.0  ;;  %3060 = vmatpush.msra.mxu2 %v3420_v26  ;;  %v3418_v28 = vld [vmem:[%s4280_s6 + $0x68] sm:$0xff]  ;;  %v3416_v30 = vld [vmem:[%s4280_s6 + $0x58] sm:$0xff] }
 0xaaf   :  { %v2876_v32 = vpop.f32.mrf.mxu3 }
 0xab0   :  { %v2919_v55 = vadd.f32 %v3461_v27, %v2908_v29  ;;  %v2853_v31 = vpop.f32.mrf.mxu2  ;;  %v2912_v37 = vsel %vm40_vm0, %v2876_v32, 0.0  ;;  %v3417_v29 = vld [vmem:[%s4280_s6 + $0x60] sm:$0xff] }
 0xab1   :  { %v2910_v34 = vsel %vm40_vm0, %v2853_v31, 0.0  ;;  %v3414_v31 = vld [vmem:[%s4280_s6 + $0x48] sm:$0xff]  ;;  %v3413_v32 = vld [vmem:[%s4280_s6 + $0x40] sm:$0xff] }
 0xab2   :  { %v2911_v35 = vadd.f32 %v2910_v34, %v2909_v33  ;;  %v2921_v36 = vadd.f32 %v2919_v55, %v3991_v18  ;;  %v3415_v55 = vld [vmem:[%s4280_s6 + $0x50] sm:$0xff]  ;;  %v3464_v33 = vld [vmem:[%s4279_s5 + $0x1] ss:$0 sm:$0xff] }
 0xab4   :  { %v2913_v38 = vadd.f32 %v2912_v37, %v2911_v35  ;;  %v2899_v39 = vpop.f32.mrf.mxu0  ;;  %v2923_v40 = vsel %vm40_vm0, %v2921_v36, 0.0 }
 0xab5   :  { %v2914_v41 = vsel %vm40_vm0, %v2899_v39, 0.0  ;;  %2924 = vadd.xlane.f32.xlu2 %v2923_v40 }
 0xab6   :  { %v2915_v42 = vadd.f32 %v2914_v41, %v2913_v38 }
 0xab8   :  { %v2920_v43 = vadd.f32 %v3461_v27, %v2915_v42  ;;  %v3419_v27 = vld [vmem:[%s4280_s6 + $0x70] sm:$0xff] }
 0xab9   :  { %3061 = vmatpush.msra.mxu2 %v3419_v27 }
 0xaba   :  { %v2922_v44 = vadd.f32 %v2920_v43, %v4005_v24  ;;  %v3409_v24 = vld [vmem:[%s4278_s4 + $0x38] sm:$0xff]  ;;  %s3170_s4 = sshll.u32 %s3590_s28, 4  ;;  %s3171_s4 = int_to_ptr.vmem [resolvable:$true] %s3170_s4 }
 0xabb   :  { %3005 = vmatpush.msrb.mxu1 %v3409_v24  ;;  %3062 = vmatpush.msra.mxu2 %v3418_v28  ;;  %v3465_v24 = vld [vmem:[%s4281_s7 + $0x9] ss:$0 sm:$0xff]  ;;  %v3131_v28 = vlaneseq }
 0xabc   :  { %v2926_v45 = vsel %vm40_vm0, %v2922_v44, 0.0 }
 0xabd   :  { %2927 = vadd.xlane.f32.xlu0 %v2926_v45  ;;  %3006 = vmatpush.msrb.mxu1 %v3408_v57 }
 0xabe   :  { %3063 = vmatpush.msra.mxu2 %v3417_v29 }
 0xabf   :  { %3007 = vmatpush.msrb.mxu1 %v3407_v58 }
 0xac0   :  { %3064 = vmatpush.msra.mxu2 %v3416_v30 }
 0xac1   :  { %3008 = vmatpush.msrb.mxu1 %v3406_v59 }
 0xac2   :  { %3065 = vmatpush.msra.mxu2 %v3415_v55 }
 0xac4   :  { %3066 = vmatpush.msra.mxu2 %v3414_v31 }
 0xac6   :  { %3067 = vmatpush.msra.mxu2 %v3413_v32  ;;  %v3466_v32 = vld [vmem:[%s4281_s7 + $0xc] ss:$0 sm:$0xff] }
 0xb28   :  { %v2925_v46 = vpop.xlane.xlu2 %2924 }
 0xb29   :  { %v2929_v47 = vmul.f32 %v2925_v46, %v3644_v10 }
 0xb2b   :  { %v2931_v18 = vsub.f32 %v2921_v36, %v2929_v47 }
 0xb2d   :  { %v2933_v49 = vmul.f32 %v2931_v18, %v2931_v18 }
 0xb2f   :  { %v2935_v50 = vsel %vm40_vm0, %v2933_v49, 0.0 }
 0xb30   :  { %2936 = vadd.xlane.f32.xlu1 %v2935_v50  ;;  %v2928_v51 = vpop.xlane.xlu0 %2927 }
 0xb31   :  { %v2930_v52 = vmul.f32 %v2928_v51, %v3644_v10 }
 0xb33   :  { %v2932_v53 = vsub.f32 %v2922_v44, %v2930_v52 }
 0xb35   :  { %v2934_v54 = vmul.f32 %v2932_v53, %v2932_v53 }
 0xb37   :  { %v2938_v56 = vsel %vm40_vm0, %v2934_v54, 0.0 }
 0xb38   :  { %2939 = vadd.xlane.f32.xlu2 %v2938_v56 }
 0xba3   :  { %v2937_v60 = vpop.xlane.xlu1 %2936 }
 0xba4   :  { %v2941_v61 = vmul.f32 %v2937_v60, %v3644_v10 }
 0xba6   :  { %v2943_v62 = vadd.f32 1e-12, %v2941_v61 }
 0xba8   :  { %3550 = vrsqrt.f32 %v2943_v62  ;;  %vm2951_vm8 = vweird.f32 %v2943_v62 }
 0xbab   :  { %v2940_v0 = vpop.xlane.xlu2 %2939 }
 0xbac   :  { %v2942_v1 = vmul.f32 %v2940_v0, %v3644_v10 }
 0xbae   :  { %v3551_v2 = vpop.eup %3550  ;;  %v2944_v3 = vadd.f32 1e-12, %v2942_v1 }
 0xbaf   :  { %v2946_v4 = vmul.f32 %v3551_v2, %v2943_v62  ;;  %vm2952_vm7 = vweird.f32 %v3551_v2 }
 0xbb0   :  { %3552 = vrsqrt.f32 %v2944_v3  ;;  %vm2953_vm9 = vmor %vm2951_vm8, %vm2952_vm7  ;;  %vm2961_vm11 = vweird.f32 %v2944_v3 }
 0xbb1   :  { %v2947_v5 = vmul.f32 %v3551_v2, %v2946_v4 }
 0xbb3   :  { %v2948_v6 = vmul.f32 0.5, %v2947_v5 }
 0xbb5   :  { %v2949_v7 = vsub.f32 1.5, %v2948_v6 }
 0xbb6   :  { %v3553_v16 = vpop.eup %3552 }
 0xbb7   :  { %v2950_v8 = vmul.f32 %v3551_v2, %v2949_v7  ;;  %v2956_v63 = vmul.f32 %v3553_v16, %v2944_v3  ;;  %vm2962_vm10 = vweird.f32 %v3553_v16 }
 0xbb8   :  { %vm2963_vm12 = vmor %vm2961_vm11, %vm2962_vm10 }
 0xbb9   :  { %v2954_v11 = vsel %vm2953_vm9, %v3551_v2, %v2950_v8  ;;  %v2957_v12 = vmul.f32 %v3553_v16, %v2956_v63 }
 0xbba   :  { %v2965_v14 = vmul.f32 %v2954_v11, %v2931_v18 }
 0xbbb   :  { %v2958_v15 = vmul.f32 0.5, %v2957_v12 }
 0xbbc   :  { %v2970_v17 = vmul.f32 %v3462_v9, %v2965_v14 }
 0xbbd   :  { %v2959_v19 = vsub.f32 1.5, %v2958_v15 }
 0xbbe   :  { %v2975_v20 = vadd.f32 %v3463_v13, %v2970_v17 }
 0xbbf   :  { %v2960_v21 = vmul.f32 %v3553_v16, %v2959_v19 }
 0xbc0   :  { %3411 = vmatmul.msk.f32.vlgmr.msrb.gmra.mxu1 %vm40_vm0, %v2975_v20 }
 0xbc1   :  { %v2964_v22 = vsel %vm2963_vm12, %v3553_v16, %v2960_v21 }
 0xbc2   :  { %v2966_v48 = vmul.f32 %v2964_v22, %v2932_v53 }
 0xbc4   :  { %v2971_v23 = vmul.f32 %v3462_v9, %v2966_v48 }
 0xbc6   :  { %v2976_v25 = vadd.f32 %v3463_v13, %v2971_v23 }
 0xbc8   :  { %3412 = vmatmul.msk.f32.gmra.mxu1 %vm40_vm0, %v2976_v25 }
 0xc3d   :  { %v3010_v34 = vpop.f32.mrf.mxu1 }
 0xc3e   :  { %v3011_v35 = vadd.f32 %v3464_v33, %v3010_v34 }
 0xc40   :  { %v3016_v36 = vmul.f32 %v3011_v35, %v3011_v35 }
 0xc42   :  { %v3018_v37 = vmul.f32 %v3016_v36, %v3011_v35 }
 0xc44   :  { %v3020_v38 = vmul.f32 0.044715, %v3018_v37 }
 0xc45   :  { %v3013_v39 = vpop.f32.mrf.mxu1 }
 0xc46   :  { %v3022_v40 = vadd.f32 %v3020_v38, %v3011_v35  ;;  %v3014_v41 = vadd.f32 %v3464_v33, %v3013_v39  ;;  %v3467_v39 = vld [vmem:[%s4281_s7 + $0xd] ss:$0 sm:$0xff] }
 0xc48   :  { %v3024_v42 = vmul.f32 0.7978846, %v3022_v40  ;;  %v3017_v43 = vmul.f32 %v3014_v41, %v3014_v41 }
 0xc4a   :  { %3554 = vtanh.f32 %v3024_v42  ;;  %v3019_v44 = vmul.f32 %v3017_v43, %v3014_v41  ;;  %v3589_v43 = vmov 0.0  }
 0xc4c   :  { %v3021_v45 = vmul.f32 0.044715, %v3019_v44 }
 0xc4e   :  { %v3023_v46 = vadd.f32 %v3021_v45, %v3014_v41 }
 0xc50   :  { %v3555_v47 = vpop.eup %3554  ;;  %v3025_v18 = vmul.f32 0.7978846, %v3023_v46 }
 0xc51   :  { %v3028_v49 = vadd.f32 1.0, %v3555_v47 }
 0xc52   :  { %3556 = vtanh.f32 %v3025_v18 }
 0xc53   :  { %v3030_v50 = vmul.f32 0.5, %v3028_v49 }
 0xc55   :  { %v3032_v51 = vmul.f32 %v3030_v50, %v3011_v35  ;;  %v3132_v35 = vand.u32 127, %v3131_v28 }
 0xc57   :  { %3421 = vmatmul.msk.f32.vlgmr.msra.gmra.mxu2 %vm1531_vm15, %v3032_v51 }
 0xc58   :  { %v3557_v52 = vpop.eup %3556 }
 0xc59   :  { %v3029_v53 = vadd.f32 1.0, %v3557_v52 }
 0xc5b   :  { %v3031_v54 = vmul.f32 0.5, %v3029_v53 }
 0xc5d   :  { %v3033_v56 = vmul.f32 %v3031_v54, %v3014_v41 }
 0xc5f   :  { %3422 = vmatmul.msk.f32.gmra.mxu2 %vm1531_vm15, %v3033_v56 }
 0xcda   :  { %v3069_v57 = vpop.f32.mrf.mxu2 }
 0xcdb   :  { %v3070_v58 = vadd.f32 %v3465_v24, %v3069_v57 }
 0xcdd   :  { %v3075_v59 = vadd.f32 %v3070_v58, %v2975_v20 }
 0xcdf   :  { %v3077_v60 = vsel %vm40_vm0, %v3075_v59, 0.0 }
 0xce0   :  { %3078 = vadd.xlane.f32.xlu1 %v3077_v60 }
 0xce2   :  { %v3072_v61 = vpop.f32.mrf.mxu2 }
 0xce3   :  { %v3073_v62 = vadd.f32 %v3465_v24, %v3072_v61 }
 0xce5   :  { %v3076_v0 = vadd.f32 %v3073_v62, %v2976_v25 }
 0xce7   :  { %v3080_v1 = vsel %vm40_vm0, %v3076_v0, 0.0 }
 0xce8   :  { %3081 = vadd.xlane.f32.xlu0 %v3080_v1 }
 0xd53   :  { %v3079_v2 = vpop.xlane.xlu1 %3078 }
 0xd54   :  { %v3083_v3 = vmul.f32 %v3079_v2, %v3644_v10 }
 0xd56   :  { %v3085_v4 = vsub.f32 %v3075_v59, %v3083_v3 }
 0xd58   :  { %v3087_v5 = vmul.f32 %v3085_v4, %v3085_v4 }
 0xd5a   :  { %v3089_v6 = vsel %vm40_vm0, %v3087_v5, 0.0 }
 0xd5b   :  { %3090 = vadd.xlane.f32.xlu0 %v3089_v6  ;;  %v3082_v7 = vpop.xlane.xlu0 %3081 }
 0xd5c   :  { %v3084_v16 = vmul.f32 %v3082_v7, %v3644_v10 }
 0xd5e   :  { %v3086_v8 = vsub.f32 %v3076_v0, %v3084_v16 }
 0xd60   :  { %v3088_v63 = vmul.f32 %v3086_v8, %v3086_v8 }
 0xd62   :  { %v3092_v9 = vsel %vm40_vm0, %v3088_v63, 0.0 }
 0xd63   :  { %3093 = vadd.xlane.f32.xlu2 %v3092_v9 }
 0xdce   :  { %v3091_v11 = vpop.xlane.xlu0 %3090 }
 0xdcf   :  { %v3095_v12 = vmul.f32 %v3091_v11, %v3644_v10 }
 0xdd1   :  { %v3097_v13 = vadd.f32 1e-12, %v3095_v12 }
 0xdd3   :  { %3558 = vrsqrt.f32 %v3097_v13  ;;  %vm3105_vm13 = vweird.f32 %v3097_v13 }
 0xdd6   :  { %v3094_v14 = vpop.xlane.xlu2 %3093 }
 0xdd7   :  { %v3096_v15 = vmul.f32 %v3094_v14, %v3644_v10  ;;  %v3134_v10 = vshrl.u32 %v3131_v28, 7 }
 0xdd9   :  { %v3559_v17 = vpop.eup %3558  ;;  %v3098_v19 = vadd.f32 1e-12, %v3096_v15  ;;  %v3135_v36 = vmul.u32 8, %v3134_v10 }
 0xdda   :  { %v3100_v20 = vmul.f32 %v3559_v17, %v3097_v13  ;;  %vm3106_vm0 = vweird.f32 %v3559_v17 }
 0xddb   :  { %3560 = vrsqrt.f32 %v3098_v19  ;;  %vm3107_vm14 = vmor %vm3105_vm13, %vm3106_vm0  ;;  %vm3115_vm1 = vweird.f32 %v3098_v19  ;;  %vm3136_vm3 = vcmp.eq.s32.totalorder %v3132_v35, %v3135_v36 }
 0xddc   :  { %v3101_v21 = vmul.f32 %v3559_v17, %v3100_v20  ;;  %v3423_v44 = vsel %vm3136_vm3, 1.0, %v3589_v43 }
 0xdde   :  { %v3102_v22 = vmul.f32 0.5, %v3101_v21 }
 0xde0   :  { %v3103_v48 = vsub.f32 1.5, %v3102_v22 }
 0xde1   :  { %v3561_v23 = vpop.eup %3560 }
 0xde2   :  { %v3110_v25 = vmul.f32 %v3561_v23, %v3098_v19  ;;  %v3104_v26 = vmul.f32 %v3559_v17, %v3103_v48  ;;  %vm3116_vm15 = vweird.f32 %v3561_v23 }
 0xde3   :  { %vm3117_vm2 = vmor %vm3115_vm1, %vm3116_vm15 }
 0xde4   :  { %v3111_v27 = vmul.f32 %v3561_v23, %v3110_v25  ;;  %v3108_v30 = vsel %vm3107_vm14, %v3559_v17, %v3104_v26 }
 0xde5   :  { %v3119_v33 = vmul.f32 %v3108_v30, %v3085_v4 }
 0xde6   :  { %v3112_v29 = vmul.f32 0.5, %v3111_v27 }
 0xde7   :  { %v3124_v40 = vmul.f32 %v3466_v32, %v3119_v33 }
 0xde8   :  { %v3113_v55 = vsub.f32 1.5, %v3112_v29 }
 0xde9   :  { %v3129_v42 = vadd.f32 %v3467_v39, %v3124_v40 }
 0xdea   :  { %v3114_v31 = vmul.f32 %v3561_v23, %v3113_v55 }
 0xdec   :  { %v3118_v34 = vsel %vm3117_vm2, %v3561_v23, %v3114_v31 }
 0xded   :  { %v3120_v37 = vmul.f32 %v3118_v34, %v3086_v8 }
 0xdef   :  { %v3125_v38 = vmul.f32 %v3466_v32, %v3120_v37 }
 0xdf1   :  { %v3130_v41 = vadd.f32 %v3467_v39, %v3125_v38 }
 0xdf3   :  { %3157 = vmatpush.msrb.mxu3 %v3130_v41 }
 0xdf5   :  { %3158 = vmatpush.msrb.mxu3 %v3129_v42 }
 0xdf6   :  { %3424 = vmatmul.msk.f32.vlgmr.msrb.gmra.mxu3 %vm3139_vm4, %v3423_v44 }
 0xe79   :  { %v3160_v45 = vpop.f32.mrf.mxu3 }
 0xe7a   :  { %3164 = vst.msk [vmem:[#allocation2] sm:$0x3] %vm3163_vm5, %v3160_v45 }
 0xe7b   :  { %3175 = dma.vmem_to_hbm [thread:$0]  %s3171_s4, 32, %s3173_s0, [#allocation3]  }
 0xe7c   :  { %3586 = dma.done.wait [#allocation3], 32  }
 0xe7d   :  { %3587 = vsyncadd [#allocation3], 4294967264 }
 0xe7e   :  { %3180 = vsyncpa [#allocation3], 1 }

</bundles_post_ra>
